<compile_context>
chip_gen: v7x
topology: tpu7x:2x2x1
jax: 0.10.0
libtpu: 0.0.40
codegen_flags: <defaults>
</compile_context>

<pallas_src>
import jax
import jax.numpy as jnp
from jax import lax
from jax.experimental import pallas as pl
from jax.experimental.pallas import tpu as pltpu

# ---------------- Static configuration (small, module-consistent) ------------
B = 2                   # batch
L = 48                  # sequence length (must exceed CL)
C0 = 4                  # starting_channels (one-hot nucleotides)
HID = 32                # l, hidden channels
WIDTHS = (3, 3, 3, 3)   # w
AR = (1, 1, 2, 2)       # dilation rates
N_RES = len(WIDTHS)
CL = 2 * sum(a * (w - 1) for a, w in zip(AR, WIDTHS))       # = 24, context crop
SKIP_AT = tuple(((i + 1) % 4 == 0) or (i + 1 == N_RES) for i in range(N_RES))
N_SKIP = sum(SKIP_AT)
N_OUT = 3
EPS = 1e-5              # nn.BatchNorm1d default eps

WMAX = max(WIDTHS)
MAXPAD = max(a * (w - 1) // 2 for a, w in zip(AR, WIDTHS))  # = 2
assert all(w == WMAX for w in WIDTHS) and WMAX % 2 == 1

# packed weight slots: each slot is a zero-padded (WMAX*HID, HID) matrix
SLOT_C1 = 0
SLOT_C2 = 1
SLOT_RC0 = 2                       # 2 + i*2 + half
SLOT_SK0 = SLOT_RC0 + N_RES * 2    # 10
SLOT_OUT = SLOT_SK0 + N_SKIP       # 12
N_SLOTS = SLOT_OUT + 1             # 13

# packed vector rows: each row is (HID,)
ROW_C1B = 0
ROW_C2B = 1
ROW_BN0 = 2                        # + 2*(i*2+half) + {0: scale, 1: shift}
ROW_RCB0 = ROW_BN0 + N_RES * 4     # 18
ROW_SKB0 = ROW_RCB0 + N_RES * 2    # 26
ROW_OB = ROW_SKB0 + N_SKIP         # 28
N_VEC = ROW_OB + 1                 # 29


# ------------------------------- kernel --------------------------------------
def spliceai_kernel(x_ref, w_ref, v_ref, y_ref, pad_ref):
    """One grid step = one batch element; activations are (L, HID) f32."""
    f32, bf16 = jnp.float32, jnp.bfloat16

    # zero the halo scratch unconditionally (each core / each step is cheap,
    # and under core-parallel execution every core must see a zero halo).
    pad_ref[...] = jnp.zeros((L + 2 * MAXPAD, HID), f32)

    def vrow(r):                                   # (1, HID) broadcast row
        return v_ref[r:r + 1, :]

    def mm(a, slot, k_rows):                       # bf16 MXU, f32 accumulation
        w = w_ref[slot, :k_rows, :]
        return jnp.dot(a.astype(bf16), w, preferred_element_type=f32)

    x = x_ref[0]                                               # (L, C0) f32
    conv = mm(x, SLOT_C1, C0) + vrow(ROW_C1B)                  # conv1: C0->HID
    skip = mm(conv, SLOT_C2, HID) + vrow(ROW_C2B)              # conv2: HID->HID

    skip_j = 0
    for i in range(N_RES):                                     # static unroll
        dil = AR[i]
        w_i = WIDTHS[i]
        res_in = conv
        h = conv
        for half in range(2):                                  # (BN, ReLU, conv) x2
            u = i * 2 + half
            # BatchNorm1d (eval) pre-folded to scale/shift in the wrapper.
            h = h * vrow(ROW_BN0 + 2 * u) + vrow(ROW_BN0 + 2 * u + 1)
            h = jnp.maximum(h, 0.0)                            # ReLU
            # dilated "same" Conv1d as ONE merged matmul over K = w*HID:
            # shifted taps read from the zero-halo scratch, concatenated on
            # the lane axis; weights were pre-reshaped to (w*HID, HID).
            pad_ref[MAXPAD:MAXPAD + L, :] = h
            pieces = []
            for k in range(w_i):
                d = (k - (w_i - 1) // 2) * dil
                if d == 0:
                    pieces.append(h)
                else:
                    pieces.append(pad_ref[MAXPAD + d:MAXPAD + d + L, :])
            taps = jnp.concatenate(pieces, axis=-1)            # (L, w*HID)
            h = mm(taps, SLOT_RC0 + u, w_i * HID) + vrow(ROW_RCB0 + u)
        conv = h + res_in                                      # residual add
        if SKIP_AT[i]:
            skip = skip + mm(conv, SLOT_SK0 + skip_j, HID) + vrow(ROW_SKB0 + skip_j)
            skip_j += 1

    # output 1x1 conv on the full length; the CL crop is done in the wrapper
    # (removes the unaligned sublane slice from the kernel).
    y = mm(skip, SLOT_OUT, HID)[:, :N_OUT] + vrow(ROW_OB)[:, :N_OUT]
    y_ref[0] = y.astype(y_ref.dtype)


# ------------------------------ wrapper --------------------------------------
def pack_params(params):
    """Fold BN, merge conv taps, and pack everything into 2 dense arrays."""
    c1w, c1b, c2w, c2b, bn, rcw, rcb, skw, skb, ow, ob = params
    K = WMAX * HID

    def slot(w):
        r, c = w.shape
        return jnp.pad(w, ((0, K - r), (0, HID - c)))

    rc = rcw.reshape(N_RES * 2, K, HID)                        # (8, 96, 32)
    wpack = jnp.concatenate(
        [slot(c1w)[None], slot(c2w)[None], rc,
         jnp.stack([slot(skw[j]) for j in range(N_SKIP)]),
         slot(ow)[None]], axis=0).astype(jnp.bfloat16)         # (13, 96, 32)

    g = bn[:, :, 0].reshape(N_RES, 2, HID)
    b_ = bn[:, :, 1].reshape(N_RES, 2, HID)
    m = bn[:, :, 2].reshape(N_RES, 2, HID)
    v = bn[:, :, 3].reshape(N_RES, 2, HID)
    scale = g * lax.rsqrt(v + EPS)                             # BN eval affine
    shift = b_ - m * scale
    bn_rows = jnp.stack([scale, shift], axis=2).reshape(N_RES * 4, HID)

    vecs = jnp.concatenate(
        [c1b[None], c2b[None], bn_rows, rcb.reshape(N_RES * 2, HID), skb,
         jnp.pad(ob, (0, HID - N_OUT))[None]], axis=0).astype(jnp.float32)
    return wpack, vecs                                         # (29, 32)


@jax.jit
def spliceai_forward(x, params):
    wpack, vecs = pack_params(params)
    y_full = pl.pallas_call(
        spliceai_kernel,
        out_shape=jax.ShapeDtypeStruct((B, L, N_OUT), jnp.float32),
        grid_spec=pltpu.PrefetchScalarGridSpec(
            num_scalar_prefetch=0,
            grid=(B,),
            in_specs=[
                pl.BlockSpec((1, L, C0), lambda b: (b, 0, 0)),
                pl.BlockSpec((N_SLOTS, WMAX * HID, HID), lambda b: (0, 0, 0)),
                pl.BlockSpec((N_VEC, HID), lambda b: (0, 0)),
            ],
            out_specs=pl.BlockSpec((1, L, N_OUT), lambda b: (b, 0, 0)),
            scratch_shapes=[pltpu.VMEM((L + 2 * MAXPAD, HID), jnp.float32)],
        ),
        compiler_params=pltpu.CompilerParams(
            dimension_semantics=("parallel",)),
    )(x, wpack, vecs)
    crop = CL // 2
    return y_full[:, crop:L - crop, :]


# ------------------------ synthetic params & reference -----------------------
def init_params(key):
    """Deterministic synthetic weights, shapes implied by SpliceAI.__init__."""
    ks = jax.random.split(key, 14)
    s = 0.1
    c1w = s * jax.random.normal(ks[0], (C0, HID), jnp.float32)     # conv1
    c1b = s * jax.random.normal(ks[1], (HID,), jnp.float32)
    c2w = s * jax.random.normal(ks[2], (HID, HID), jnp.float32)    # conv2
    c2b = s * jax.random.normal(ks[3], (HID,), jnp.float32)
    # BatchNorm1d (eval) params per residual half: [gamma, beta, mean, var]
    gamma = 1.0 + s * jax.random.normal(ks[4], (N_RES, 2, 1, HID), jnp.float32)
    beta = s * jax.random.normal(ks[5], (N_RES, 2, 1, HID), jnp.float32)
    mean = s * jax.random.normal(ks[6], (N_RES, 2, 1, HID), jnp.float32)
    var = 0.5 + jnp.abs(jax.random.normal(ks[7], (N_RES, 2, 1, HID), jnp.float32))
    bn = jnp.concatenate([gamma, beta, mean, var], axis=2)          # (N_RES,2,4,HID)
    # ResidualUnit dilated convs: (unit, which, tap, Cin, Cout)
    rcw = s * jax.random.normal(ks[8], (N_RES, 2, WMAX, HID, HID), jnp.float32)
    rcb = s * jax.random.normal(ks[9], (N_RES, 2, HID), jnp.float32)
    # skip 1x1 convs (units where _skip_connection(i) is True)
    skw = s * jax.random.normal(ks[10], (N_SKIP, HID, HID), jnp.float32)
    skb = s * jax.random.normal(ks[11], (N_SKIP, HID), jnp.float32)
    # output 1x1 conv: HID -> 3
    ow = s * jax.random.normal(ks[12], (HID, N_OUT), jnp.float32)
    ob = s * jax.random.normal(ks[13], (N_OUT,), jnp.float32)
    return (c1w, c1b, c2w, c2b, bn, rcw, rcb, skw, skb, ow, ob)


def reference_forward(x, params, matmul_dtype=jnp.float32):
    """Pure-JAX reference (independent conv lowering).  matmul_dtype lets us
    reproduce the kernel's bf16-operand / f32-accumulation numerics exactly."""
    c1w, c1b, c2w, c2b, bn, rcw, rcb, skw, skb, ow, ob = params
    md = lambda a: a.astype(matmul_dtype)

    def mm1x1(h, w):
        return jnp.einsum('blc,cd->bld', md(h), md(w),
                          preferred_element_type=jnp.float32)

    conv = mm1x1(x, c1w) + c1b
    skip = mm1x1(conv, c2w) + c2b
    skip_j = 0
    for i in range(N_RES):
        dil, w = AR[i], WIDTHS[i]
        pad = dil * (w - 1) // 2
        res_in = conv
        h = conv
        for half in range(2):
            gamma, beta, mean, var = (bn[i, half, j] for j in range(4))
            h = (h - mean) * lax.rsqrt(var + EPS) * gamma + beta
            h = jax.nn.relu(h)
            h = lax.conv_general_dilated(
                md(h), md(rcw[i, half, :w]), window_strides=(1,),
                padding=[(pad, pad)], rhs_dilation=(dil,),
                dimension_numbers=('NWC', 'WIO', 'NWC'),
                preferred_element_type=jnp.float32) + rcb[i, half]
        conv = h + res_in
        if SKIP_AT[i]:
            skip = skip + mm1x1(conv, skw[skip_j]) + skb[skip_j]
            skip_j += 1
    sk = skip[:, CL // 2:L - CL // 2, :]
    return mm1x1(sk, ow) + ob


if __name__ == "__main__":
    key = jax.random.PRNGKey(0)
    kx, kp = jax.random.split(key)
    x = jax.random.normal(kx, (B, L, C0), jnp.float32)   # module input: (B, L, C)
    params = init_params(kp)

    y = spliceai_forward(x, params)
    jax.block_until_ready(y)
    assert y.shape == (B, L - CL, N_OUT)

    # tight structural check: reference with the same bf16 operands / f32 accum
    y_ref_bf16 = reference_forward(x, params, jnp.bfloat16)
    err_t = float(jnp.max(jnp.abs(y - y_ref_bf16)))
    assert jnp.allclose(y, y_ref_bf16, atol=5e-3, rtol=5e-3), f"struct err {err_t}"

    # loose check against the full-f32 module semantics (bf16 operand rounding)
    y_ref_f32 = reference_forward(x, params, jnp.float32)
    err_l = float(jnp.max(jnp.abs(y - y_ref_f32)))
    assert jnp.allclose(y, y_ref_f32, atol=5e-2, rtol=5e-2), f"f32 err {err_l}"

    print("KERNEL_OK")
</pallas_src>

<mosaic_0001>
module attributes {stable_mosaic.version = 11 : i64} {
  func.func @spliceai_kernel(%arg0: i32, %arg1: memref<1x48x4xf32, #tpu.memory_space<vmem>>, %arg2: memref<12x96x32xbf16, #tpu.memory_space<vmem>>, %arg3: memref<28x32xf32, #tpu.memory_space<vmem>>, %arg4: memref<1x48x3xf32, #tpu.memory_space<vmem>>, %arg5: memref<52x32xf32, #tpu.memory_space<vmem>>) attributes {dimension_semantics = [#tpu.dimension_semantics<parallel>], iteration_bounds = array<i64: 2>, scalar_prefetch = 0 : i64, scratch_operands = 1 : i64, tpu.core_type = #tpu.core_type<tc>, window_params = [{transform_indices = @transform_0, window_bounds = array<i64: 1, 48, 4>}, {pipeline_mode = #tpu.pipeline_mode<synchronous>, transform_indices = @transform_1, window_bounds = array<i64: 12, 96, 32>}, {pipeline_mode = #tpu.pipeline_mode<synchronous>, transform_indices = @transform_2, window_bounds = array<i64: 28, 32>}, {transform_indices = @transform_3, window_bounds = array<i64: 1, 48, 3>}]} {
    %cst = arith.constant 0.000000e+00 : f32
    %0 = vector.broadcast %cst : f32 to vector<52x32xf32>
    %c0 = arith.constant 0 : index
    %c0_0 = arith.constant 0 : index
    %1 = vector.load %arg5[%c0, %c0_0] : memref<52x32xf32, #tpu.memory_space<vmem>>, vector<52x32xf32>
    tpu.vector_store %arg5[%c0, %c0_0], %0 {strides = array<i32>} : memref<52x32xf32, #tpu.memory_space<vmem>>, vector<52x32xf32>,
    %c0_1 = arith.constant 0 : index
    %c0_2 = arith.constant 0 : index
    %c0_3 = arith.constant 0 : index
    %2 = vector.load %arg1[%c0_1, %c0_2, %c0_3] : memref<1x48x4xf32, #tpu.memory_space<vmem>>, vector<1x48x4xf32>
    %3 = vector.shape_cast %2 : vector<1x48x4xf32> to vector<48x4xf32>
    %c0_4 = arith.constant 0 : index
    %c0_5 = arith.constant 0 : index
    %c0_6 = arith.constant 0 : index
    %4 = vector.load %arg2[%c0_4, %c0_5, %c0_6] : memref<12x96x32xbf16, #tpu.memory_space<vmem>>, vector<1x4x32xbf16>
    %5 = vector.shape_cast %4 : vector<1x4x32xbf16> to vector<4x32xbf16>
    %6 = arith.truncf %3 : vector<48x4xf32> to vector<48x4xbf16>
    %cst_7 = arith.constant dense<0.000000e+00> : vector<48x32xf32>
    %7 = tpu.matmul %6, %5, %cst_7 {dimension_numbers = #tpu.dot_dimension_numbers<[1], [0], [0], [1], [0, 0, 1, 1], [], []>} : vector<48x4xbf16>, vector<4x32xbf16>, vector<48x32xf32> -> vector<48x32xf32>
    %c0_8 = arith.constant 0 : index
    %c0_9 = arith.constant 0 : index
    %8 = vector.load %arg3[%c0_8, %c0_9] : memref<28x32xf32, #tpu.memory_space<vmem>>, vector<1x32xf32>
    %9 = vector.broadcast %8 : vector<1x32xf32> to vector<48x32xf32>
    %10 = arith.addf %7, %9 : vector<48x32xf32>
    %c1 = arith.constant 1 : index
    %c0_10 = arith.constant 0 : index
    %c0_11 = arith.constant 0 : index
    %11 = vector.load %arg2[%c1, %c0_10, %c0_11] : memref<12x96x32xbf16, #tpu.memory_space<vmem>>, vector<1x32x32xbf16>
    %12 = vector.shape_cast %11 : vector<1x32x32xbf16> to vector<32x32xbf16>
    %13 = arith.truncf %10 : vector<48x32xf32> to vector<48x32xbf16>
    %cst_12 = arith.constant dense<0.000000e+00> : vector<48x32xf32>
    %14 = tpu.matmul %13, %12, %cst_12 {dimension_numbers = #tpu.dot_dimension_numbers<[1], [0], [0], [1], [0, 0, 1, 1], [], []>} : vector<48x32xbf16>, vector<32x32xbf16>, vector<48x32xf32> -> vector<48x32xf32>
    %c1_13 = arith.constant 1 : index
    %c0_14 = arith.constant 0 : index
    %15 = vector.load %arg3[%c1_13, %c0_14] : memref<28x32xf32, #tpu.memory_space<vmem>>, vector<1x32xf32>
    %16 = vector.broadcast %15 : vector<1x32xf32> to vector<48x32xf32>
    %17 = arith.addf %14, %16 : vector<48x32xf32>
    %c2 = arith.constant 2 : index
    %c0_15 = arith.constant 0 : index
    %18 = vector.load %arg3[%c2, %c0_15] : memref<28x32xf32, #tpu.memory_space<vmem>>, vector<1x32xf32>
    %19 = vector.broadcast %18 : vector<1x32xf32> to vector<48x32xf32>
    %20 = arith.mulf %10, %19 : vector<48x32xf32>
    %c3 = arith.constant 3 : index
    %c0_16 = arith.constant 0 : index
    %21 = vector.load %arg3[%c3, %c0_16] : memref<28x32xf32, #tpu.memory_space<vmem>>, vector<1x32xf32>
    %22 = vector.broadcast %21 : vector<1x32xf32> to vector<48x32xf32>
    %23 = arith.addf %20, %22 : vector<48x32xf32>
    %cst_17 = arith.constant 0.000000e+00 : f32
    %24 = vector.broadcast %cst_17 : f32 to vector<48x32xf32>
    %25 = arith.maximumf %23, %24 : vector<48x32xf32>
    %c2_18 = arith.constant 2 : index
    %c0_19 = arith.constant 0 : index
    %26 = vector.load %arg5[%c2_18, %c0_19] : memref<52x32xf32, #tpu.memory_space<vmem>>, vector<48x32xf32>
    tpu.vector_store %arg5[%c2_18, %c0_19], %25 {strides = array<i32>} : memref<52x32xf32, #tpu.memory_space<vmem>>, vector<48x32xf32>,
    %c1_20 = arith.constant 1 : index
    %c0_21 = arith.constant 0 : index
    %27 = vector.load %arg5[%c1_20, %c0_21] : memref<52x32xf32, #tpu.memory_space<vmem>>, vector<48x32xf32>
    %c3_22 = arith.constant 3 : index
    %c0_23 = arith.constant 0 : index
    %28 = vector.load %arg5[%c3_22, %c0_23] : memref<52x32xf32, #tpu.memory_space<vmem>>, vector<48x32xf32>
    %29 = tpu.concatenate %27, %25, %28 in 1 : vector<48x32xf32>, vector<48x32xf32>, vector<48x32xf32> -> vector<48x96xf32>
    %c2_24 = arith.constant 2 : index
    %c0_25 = arith.constant 0 : index
    %c0_26 = arith.constant 0 : index
    %30 = vector.load %arg2[%c2_24, %c0_25, %c0_26] : memref<12x96x32xbf16, #tpu.memory_space<vmem>>, vector<1x96x32xbf16>
    %31 = vector.shape_cast %30 : vector<1x96x32xbf16> to vector<96x32xbf16>
    %32 = arith.truncf %29 : vector<48x96xf32> to vector<48x96xbf16>
    %cst_27 = arith.constant dense<0.000000e+00> : vector<48x32xf32>
    %33 = tpu.matmul %32, %31, %cst_27 {dimension_numbers = #tpu.dot_dimension_numbers<[1], [0], [0], [1], [0, 0, 1, 1], [], []>} : vector<48x96xbf16>, vector<96x32xbf16>, vector<48x32xf32> -> vector<48x32xf32>
    %c18 = arith.constant 18 : index
    %c0_28 = arith.constant 0 : index
    %34 = vector.load %arg3[%c18, %c0_28] : memref<28x32xf32, #tpu.memory_space<vmem>>, vector<1x32xf32>
    %35 = vector.broadcast %34 : vector<1x32xf32> to vector<48x32xf32>
    %36 = arith.addf %33, %35 : vector<48x32xf32>
    %c4 = arith.constant 4 : index
    %c0_29 = arith.constant 0 : index
    %37 = vector.load %arg3[%c4, %c0_29] : memref<28x32xf32, #tpu.memory_space<vmem>>, vector<1x32xf32>
    %38 = vector.broadcast %37 : vector<1x32xf32> to vector<48x32xf32>
    %39 = arith.mulf %36, %38 : vector<48x32xf32>
    %c5 = arith.constant 5 : index
    %c0_30 = arith.constant 0 : index
    %40 = vector.load %arg3[%c5, %c0_30] : memref<28x32xf32, #tpu.memory_space<vmem>>, vector<1x32xf32>
    %41 = vector.broadcast %40 : vector<1x32xf32> to vector<48x32xf32>
    %42 = arith.addf %39, %41 : vector<48x32xf32>
    %cst_31 = arith.constant 0.000000e+00 : f32
    %43 = vector.broadcast %cst_31 : f32 to vector<48x32xf32>
    %44 = arith.maximumf %42, %43 : vector<48x32xf32>
    %c2_32 = arith.constant 2 : index
    %c0_33 = arith.constant 0 : index
    %45 = vector.load %arg5[%c2_32, %c0_33] : memref<52x32xf32, #tpu.memory_space<vmem>>, vector<48x32xf32>
    tpu.vector_store %arg5[%c2_32, %c0_33], %44 {strides = array<i32>} : memref<52x32xf32, #tpu.memory_space<vmem>>, vector<48x32xf32>,
    %c1_34 = arith.constant 1 : index
    %c0_35 = arith.constant 0 : index
    %46 = vector.load %arg5[%c1_34, %c0_35] : memref<52x32xf32, #tpu.memory_space<vmem>>, vector<48x32xf32>
    %c3_36 = arith.constant 3 : index
    %c0_37 = arith.constant 0 : index
    %47 = vector.load %arg5[%c3_36, %c0_37] : memref<52x32xf32, #tpu.memory_space<vmem>>, vector<48x32xf32>
    %48 = tpu.concatenate %46, %44, %47 in 1 : vector<48x32xf32>, vector<48x32xf32>, vector<48x32xf32> -> vector<48x96xf32>
    %c3_38 = arith.constant 3 : index
    %c0_39 = arith.constant 0 : index
    %c0_40 = arith.constant 0 : index
    %49 = vector.load %arg2[%c3_38, %c0_39, %c0_40] : memref<12x96x32xbf16, #tpu.memory_space<vmem>>, vector<1x96x32xbf16>
    %50 = vector.shape_cast %49 : vector<1x96x32xbf16> to vector<96x32xbf16>
    %51 = arith.truncf %48 : vector<48x96xf32> to vector<48x96xbf16>
    %cst_41 = arith.constant dense<0.000000e+00> : vector<48x32xf32>
    %52 = tpu.matmul %51, %50, %cst_41 {dimension_numbers = #tpu.dot_dimension_numbers<[1], [0], [0], [1], [0, 0, 1, 1], [], []>} : vector<48x96xbf16>, vector<96x32xbf16>, vector<48x32xf32> -> vector<48x32xf32>
    %c19 = arith.constant 19 : index
    %c0_42 = arith.constant 0 : index
    %53 = vector.load %arg3[%c19, %c0_42] : memref<28x32xf32, #tpu.memory_space<vmem>>, vector<1x32xf32>
    %54 = vector.broadcast %53 : vector<1x32xf32> to vector<48x32xf32>
    %55 = arith.addf %52, %54 : vector<48x32xf32>
    %56 = arith.addf %55, %10 : vector<48x32xf32>
    %c6 = arith.constant 6 : index
    %c0_43 = arith.constant 0 : index
    %57 = vector.load %arg3[%c6, %c0_43] : memref<28x32xf32, #tpu.memory_space<vmem>>, vector<1x32xf32>
    %58 = vector.broadcast %57 : vector<1x32xf32> to vector<48x32xf32>
    %59 = arith.mulf %56, %58 : vector<48x32xf32>
    %c7 = arith.constant 7 : index
    %c0_44 = arith.constant 0 : index
    %60 = vector.load %arg3[%c7, %c0_44] : memref<28x32xf32, #tpu.memory_space<vmem>>, vector<1x32xf32>
    %61 = vector.broadcast %60 : vector<1x32xf32> to vector<48x32xf32>
    %62 = arith.addf %59, %61 : vector<48x32xf32>
    %cst_45 = arith.constant 0.000000e+00 : f32
    %63 = vector.broadcast %cst_45 : f32 to vector<48x32xf32>
    %64 = arith.maximumf %62, %63 : vector<48x32xf32>
    %c2_46 = arith.constant 2 : index
    %c0_47 = arith.constant 0 : index
    %65 = vector.load %arg5[%c2_46, %c0_47] : memref<52x32xf32, #tpu.memory_space<vmem>>, vector<48x32xf32>
    tpu.vector_store %arg5[%c2_46, %c0_47], %64 {strides = array<i32>} : memref<52x32xf32, #tpu.memory_space<vmem>>, vector<48x32xf32>,
    %c1_48 = arith.constant 1 : index
    %c0_49 = arith.constant 0 : index
    %66 = vector.load %arg5[%c1_48, %c0_49] : memref<52x32xf32, #tpu.memory_space<vmem>>, vector<48x32xf32>
    %c3_50 = arith.constant 3 : index
    %c0_51 = arith.constant 0 : index
    %67 = vector.load %arg5[%c3_50, %c0_51] : memref<52x32xf32, #tpu.memory_space<vmem>>, vector<48x32xf32>
    %68 = tpu.concatenate %66, %64, %67 in 1 : vector<48x32xf32>, vector<48x32xf32>, vector<48x32xf32> -> vector<48x96xf32>
    %c4_52 = arith.constant 4 : index
    %c0_53 = arith.constant 0 : index
    %c0_54 = arith.constant 0 : index
    %69 = vector.load %arg2[%c4_52, %c0_53, %c0_54] : memref<12x96x32xbf16, #tpu.memory_space<vmem>>, vector<1x96x32xbf16>
    %70 = vector.shape_cast %69 : vector<1x96x32xbf16> to vector<96x32xbf16>
    %71 = arith.truncf %68 : vector<48x96xf32> to vector<48x96xbf16>
    %cst_55 = arith.constant dense<0.000000e+00> : vector<48x32xf32>
    %72 = tpu.matmul %71, %70, %cst_55 {dimension_numbers = #tpu.dot_dimension_numbers<[1], [0], [0], [1], [0, 0, 1, 1], [], []>} : vector<48x96xbf16>, vector<96x32xbf16>, vector<48x32xf32> -> vector<48x32xf32>
    %c20 = arith.constant 20 : index
    %c0_56 = arith.constant 0 : index
    %73 = vector.load %arg3[%c20, %c0_56] : memref<28x32xf32, #tpu.memory_space<vmem>>, vector<1x32xf32>
    %74 = vector.broadcast %73 : vector<1x32xf32> to vector<48x32xf32>
    %75 = arith.addf %72, %74 : vector<48x32xf32>
    %c8 = arith.constant 8 : index
    %c0_57 = arith.constant 0 : index
    %76 = vector.load %arg3[%c8, %c0_57] : memref<28x32xf32, #tpu.memory_space<vmem>>, vector<1x32xf32>
    %77 = vector.broadcast %76 : vector<1x32xf32> to vector<48x32xf32>
    %78 = arith.mulf %75, %77 : vector<48x32xf32>
    %c9 = arith.constant 9 : index
    %c0_58 = arith.constant 0 : index
    %79 = vector.load %arg3[%c9, %c0_58] : memref<28x32xf32, #tpu.memory_space<vmem>>, vector<1x32xf32>
    %80 = vector.broadcast %79 : vector<1x32xf32> to vector<48x32xf32>
    %81 = arith.addf %78, %80 : vector<48x32xf32>
    %cst_59 = arith.constant 0.000000e+00 : f32
    %82 = vector.broadcast %cst_59 : f32 to vector<48x32xf32>
    %83 = arith.maximumf %81, %82 : vector<48x32xf32>
    %c2_60 = arith.constant 2 : index
    %c0_61 = arith.constant 0 : index
    %84 = vector.load %arg5[%c2_60, %c0_61] : memref<52x32xf32, #tpu.memory_space<vmem>>, vector<48x32xf32>
    tpu.vector_store %arg5[%c2_60, %c0_61], %83 {strides = array<i32>} : memref<52x32xf32, #tpu.memory_space<vmem>>, vector<48x32xf32>,
    %c1_62 = arith.constant 1 : index
    %c0_63 = arith.constant 0 : index
    %85 = vector.load %arg5[%c1_62, %c0_63] : memref<52x32xf32, #tpu.memory_space<vmem>>, vector<48x32xf32>
    %c3_64 = arith.constant 3 : index
    %c0_65 = arith.constant 0 : index
    %86 = vector.load %arg5[%c3_64, %c0_65] : memref<52x32xf32, #tpu.memory_space<vmem>>, vector<48x32xf32>
    %87 = tpu.concatenate %85, %83, %86 in 1 : vector<48x32xf32>, vector<48x32xf32>, vector<48x32xf32> -> vector<48x96xf32>
    %c5_66 = arith.constant 5 : index
    %c0_67 = arith.constant 0 : index
    %c0_68 = arith.constant 0 : index
    %88 = vector.load %arg2[%c5_66, %c0_67, %c0_68] : memref<12x96x32xbf16, #tpu.memory_space<vmem>>, vector<1x96x32xbf16>
    %89 = vector.shape_cast %88 : vector<1x96x32xbf16> to vector<96x32xbf16>
    %90 = arith.truncf %87 : vector<48x96xf32> to vector<48x96xbf16>
    %cst_69 = arith.constant dense<0.000000e+00> : vector<48x32xf32>
    %91 = tpu.matmul %90, %89, %cst_69 {dimension_numbers = #tpu.dot_dimension_numbers<[1], [0], [0], [1], [0, 0, 1, 1], [], []>} : vector<48x96xbf16>, vector<96x32xbf16>, vector<48x32xf32> -> vector<48x32xf32>
    %c21 = arith.constant 21 : index
    %c0_70 = arith.constant 0 : index
    %92 = vector.load %arg3[%c21, %c0_70] : memref<28x32xf32, #tpu.memory_space<vmem>>, vector<1x32xf32>
    %93 = vector.broadcast %92 : vector<1x32xf32> to vector<48x32xf32>
    %94 = arith.addf %91, %93 : vector<48x32xf32>
    %95 = arith.addf %94, %56 : vector<48x32xf32>
    %c10 = arith.constant 10 : index
    %c0_71 = arith.constant 0 : index
    %96 = vector.load %arg3[%c10, %c0_71] : memref<28x32xf32, #tpu.memory_space<vmem>>, vector<1x32xf32>
    %97 = vector.broadcast %96 : vector<1x32xf32> to vector<48x32xf32>
    %98 = arith.mulf %95, %97 : vector<48x32xf32>
    %c11 = arith.constant 11 : index
    %c0_72 = arith.constant 0 : index
    %99 = vector.load %arg3[%c11, %c0_72] : memref<28x32xf32, #tpu.memory_space<vmem>>, vector<1x32xf32>
    %100 = vector.broadcast %99 : vector<1x32xf32> to vector<48x32xf32>
    %101 = arith.addf %98, %100 : vector<48x32xf32>
    %cst_73 = arith.constant 0.000000e+00 : f32
    %102 = vector.broadcast %cst_73 : f32 to vector<48x32xf32>
    %103 = arith.maximumf %101, %102 : vector<48x32xf32>
    %c2_74 = arith.constant 2 : index
    %c0_75 = arith.constant 0 : index
    %104 = vector.load %arg5[%c2_74, %c0_75] : memref<52x32xf32, #tpu.memory_space<vmem>>, vector<48x32xf32>
    tpu.vector_store %arg5[%c2_74, %c0_75], %103 {strides = array<i32>} : memref<52x32xf32, #tpu.memory_space<vmem>>, vector<48x32xf32>,
    %c0_76 = arith.constant 0 : index
    %c0_77 = arith.constant 0 : index
    %105 = vector.load %arg5[%c0_76, %c0_77] : memref<52x32xf32, #tpu.memory_space<vmem>>, vector<48x32xf32>
    %c4_78 = arith.constant 4 : index
    %c0_79 = arith.constant 0 : index
    %106 = vector.load %arg5[%c4_78, %c0_79] : memref<52x32xf32, #tpu.memory_space<vmem>>, vector<48x32xf32>
    %107 = tpu.concatenate %105, %103, %106 in 1 : vector<48x32xf32>, vector<48x32xf32>, vector<48x32xf32> -> vector<48x96xf32>
    %c6_80 = arith.constant 6 : index
    %c0_81 = arith.constant 0 : index
    %c0_82 = arith.constant 0 : index
    %108 = vector.load %arg2[%c6_80, %c0_81, %c0_82] : memref<12x96x32xbf16, #tpu.memory_space<vmem>>, vector<1x96x32xbf16>
    %109 = vector.shape_cast %108 : vector<1x96x32xbf16> to vector<96x32xbf16>
    %110 = arith.truncf %107 : vector<48x96xf32> to vector<48x96xbf16>
    %cst_83 = arith.constant dense<0.000000e+00> : vector<48x32xf32>
    %111 = tpu.matmul %110, %109, %cst_83 {dimension_numbers = #tpu.dot_dimension_numbers<[1], [0], [0], [1], [0, 0, 1, 1], [], []>} : vector<48x96xbf16>, vector<96x32xbf16>, vector<48x32xf32> -> vector<48x32xf32>
    %c22 = arith.constant 22 : index
    %c0_84 = arith.constant 0 : index
    %112 = vector.load %arg3[%c22, %c0_84] : memref<28x32xf32, #tpu.memory_space<vmem>>, vector<1x32xf32>
    %113 = vector.broadcast %112 : vector<1x32xf32> to vector<48x32xf32>
    %114 = arith.addf %111, %113 : vector<48x32xf32>
    %c12 = arith.constant 12 : index
    %c0_85 = arith.constant 0 : index
    %115 = vector.load %arg3[%c12, %c0_85] : memref<28x32xf32, #tpu.memory_space<vmem>>, vector<1x32xf32>
    %116 = vector.broadcast %115 : vector<1x32xf32> to vector<48x32xf32>
    %117 = arith.mulf %114, %116 : vector<48x32xf32>
    %c13 = arith.constant 13 : index
    %c0_86 = arith.constant 0 : index
    %118 = vector.load %arg3[%c13, %c0_86] : memref<28x32xf32, #tpu.memory_space<vmem>>, vector<1x32xf32>
    %119 = vector.broadcast %118 : vector<1x32xf32> to vector<48x32xf32>
    %120 = arith.addf %117, %119 : vector<48x32xf32>
    %cst_87 = arith.constant 0.000000e+00 : f32
    %121 = vector.broadcast %cst_87 : f32 to vector<48x32xf32>
    %122 = arith.maximumf %120, %121 : vector<48x32xf32>
    %c2_88 = arith.constant 2 : index
    %c0_89 = arith.constant 0 : index
    %123 = vector.load %arg5[%c2_88, %c0_89] : memref<52x32xf32, #tpu.memory_space<vmem>>, vector<48x32xf32>
    tpu.vector_store %arg5[%c2_88, %c0_89], %122 {strides = array<i32>} : memref<52x32xf32, #tpu.memory_space<vmem>>, vector<48x32xf32>,
    %c0_90 = arith.constant 0 : index
    %c0_91 = arith.constant 0 : index
    %124 = vector.load %arg5[%c0_90, %c0_91] : memref<52x32xf32, #tpu.memory_space<vmem>>, vector<48x32xf32>
    %c4_92 = arith.constant 4 : index
    %c0_93 = arith.constant 0 : index
    %125 = vector.load %arg5[%c4_92, %c0_93] : memref<52x32xf32, #tpu.memory_space<vmem>>, vector<48x32xf32>
    %126 = tpu.concatenate %124, %122, %125 in 1 : vector<48x32xf32>, vector<48x32xf32>, vector<48x32xf32> -> vector<48x96xf32>
    %c7_94 = arith.constant 7 : index
    %c0_95 = arith.constant 0 : index
    %c0_96 = arith.constant 0 : index
    %127 = vector.load %arg2[%c7_94, %c0_95, %c0_96] : memref<12x96x32xbf16, #tpu.memory_space<vmem>>, vector<1x96x32xbf16>
    %128 = vector.shape_cast %127 : vector<1x96x32xbf16> to vector<96x32xbf16>
    %129 = arith.truncf %126 : vector<48x96xf32> to vector<48x96xbf16>
    %cst_97 = arith.constant dense<0.000000e+00> : vector<48x32xf32>
    %130 = tpu.matmul %129, %128, %cst_97 {dimension_numbers = #tpu.dot_dimension_numbers<[1], [0], [0], [1], [0, 0, 1, 1], [], []>} : vector<48x96xbf16>, vector<96x32xbf16>, vector<48x32xf32> -> vector<48x32xf32>
    %c23 = arith.constant 23 : index
    %c0_98 = arith.constant 0 : index
    %131 = vector.load %arg3[%c23, %c0_98] : memref<28x32xf32, #tpu.memory_space<vmem>>, vector<1x32xf32>
    %132 = vector.broadcast %131 : vector<1x32xf32> to vector<48x32xf32>
    %133 = arith.addf %130, %132 : vector<48x32xf32>
    %134 = arith.addf %133, %95 : vector<48x32xf32>
    %c14 = arith.constant 14 : index
    %c0_99 = arith.constant 0 : index
    %135 = vector.load %arg3[%c14, %c0_99] : memref<28x32xf32, #tpu.memory_space<vmem>>, vector<1x32xf32>
    %136 = vector.broadcast %135 : vector<1x32xf32> to vector<48x32xf32>
    %137 = arith.mulf %134, %136 : vector<48x32xf32>
    %c15 = arith.constant 15 : index
    %c0_100 = arith.constant 0 : index
    %138 = vector.load %arg3[%c15, %c0_100] : memref<28x32xf32, #tpu.memory_space<vmem>>, vector<1x32xf32>
    %139 = vector.broadcast %138 : vector<1x32xf32> to vector<48x32xf32>
    %140 = arith.addf %137, %139 : vector<48x32xf32>
    %cst_101 = arith.constant 0.000000e+00 : f32
    %141 = vector.broadcast %cst_101 : f32 to vector<48x32xf32>
    %142 = arith.maximumf %140, %141 : vector<48x32xf32>
    %c2_102 = arith.constant 2 : index
    %c0_103 = arith.constant 0 : index
    %143 = vector.load %arg5[%c2_102, %c0_103] : memref<52x32xf32, #tpu.memory_space<vmem>>, vector<48x32xf32>
    tpu.vector_store %arg5[%c2_102, %c0_103], %142 {strides = array<i32>} : memref<52x32xf32, #tpu.memory_space<vmem>>, vector<48x32xf32>,
    %c0_104 = arith.constant 0 : index
    %c0_105 = arith.constant 0 : index
    %144 = vector.load %arg5[%c0_104, %c0_105] : memref<52x32xf32, #tpu.memory_space<vmem>>, vector<48x32xf32>
    %c4_106 = arith.constant 4 : index
    %c0_107 = arith.constant 0 : index
    %145 = vector.load %arg5[%c4_106, %c0_107] : memref<52x32xf32, #tpu.memory_space<vmem>>, vector<48x32xf32>
    %146 = tpu.concatenate %144, %142, %145 in 1 : vector<48x32xf32>, vector<48x32xf32>, vector<48x32xf32> -> vector<48x96xf32>
    %c8_108 = arith.constant 8 : index
    %c0_109 = arith.constant 0 : index
    %c0_110 = arith.constant 0 : index
    %147 = vector.load %arg2[%c8_108, %c0_109, %c0_110] : memref<12x96x32xbf16, #tpu.memory_space<vmem>>, vector<1x96x32xbf16>
    %148 = vector.shape_cast %147 : vector<1x96x32xbf16> to vector<96x32xbf16>
    %149 = arith.truncf %146 : vector<48x96xf32> to vector<48x96xbf16>
    %cst_111 = arith.constant dense<0.000000e+00> : vector<48x32xf32>
    %150 = tpu.matmul %149, %148, %cst_111 {dimension_numbers = #tpu.dot_dimension_numbers<[1], [0], [0], [1], [0, 0, 1, 1], [], []>} : vector<48x96xbf16>, vector<96x32xbf16>, vector<48x32xf32> -> vector<48x32xf32>
    %c24 = arith.constant 24 : index
    %c0_112 = arith.constant 0 : index
    %151 = vector.load %arg3[%c24, %c0_112] : memref<28x32xf32, #tpu.memory_space<vmem>>, vector<1x32xf32>
    %152 = vector.broadcast %151 : vector<1x32xf32> to vector<48x32xf32>
    %153 = arith.addf %150, %152 : vector<48x32xf32>
    %c16 = arith.constant 16 : index
    %c0_113 = arith.constant 0 : index
    %154 = vector.load %arg3[%c16, %c0_113] : memref<28x32xf32, #tpu.memory_space<vmem>>, vector<1x32xf32>
    %155 = vector.broadcast %154 : vector<1x32xf32> to vector<48x32xf32>
    %156 = arith.mulf %153, %155 : vector<48x32xf32>
    %c17 = arith.constant 17 : index
    %c0_114 = arith.constant 0 : index
    %157 = vector.load %arg3[%c17, %c0_114] : memref<28x32xf32, #tpu.memory_space<vmem>>, vector<1x32xf32>
    %158 = vector.broadcast %157 : vector<1x32xf32> to vector<48x32xf32>
    %159 = arith.addf %156, %158 : vector<48x32xf32>
    %cst_115 = arith.constant 0.000000e+00 : f32
    %160 = vector.broadcast %cst_115 : f32 to vector<48x32xf32>
    %161 = arith.maximumf %159, %160 : vector<48x32xf32>
    %c2_116 = arith.constant 2 : index
    %c0_117 = arith.constant 0 : index
    %162 = vector.load %arg5[%c2_116, %c0_117] : memref<52x32xf32, #tpu.memory_space<vmem>>, vector<48x32xf32>
    tpu.vector_store %arg5[%c2_116, %c0_117], %161 {strides = array<i32>} : memref<52x32xf32, #tpu.memory_space<vmem>>, vector<48x32xf32>,
    %c0_118 = arith.constant 0 : index
    %c0_119 = arith.constant 0 : index
    %163 = vector.load %arg5[%c0_118, %c0_119] : memref<52x32xf32, #tpu.memory_space<vmem>>, vector<48x32xf32>
    %c4_120 = arith.constant 4 : index
    %c0_121 = arith.constant 0 : index
    %164 = vector.load %arg5[%c4_120, %c0_121] : memref<52x32xf32, #tpu.memory_space<vmem>>, vector<48x32xf32>
    %165 = tpu.concatenate %163, %161, %164 in 1 : vector<48x32xf32>, vector<48x32xf32>, vector<48x32xf32> -> vector<48x96xf32>
    %c9_122 = arith.constant 9 : index
    %c0_123 = arith.constant 0 : index
    %c0_124 = arith.constant 0 : index
    %166 = vector.load %arg2[%c9_122, %c0_123, %c0_124] : memref<12x96x32xbf16, #tpu.memory_space<vmem>>, vector<1x96x32xbf16>
    %167 = vector.shape_cast %166 : vector<1x96x32xbf16> to vector<96x32xbf16>
    %168 = arith.truncf %165 : vector<48x96xf32> to vector<48x96xbf16>
    %cst_125 = arith.constant dense<0.000000e+00> : vector<48x32xf32>
    %169 = tpu.matmul %168, %167, %cst_125 {dimension_numbers = #tpu.dot_dimension_numbers<[1], [0], [0], [1], [0, 0, 1, 1], [], []>} : vector<48x96xbf16>, vector<96x32xbf16>, vector<48x32xf32> -> vector<48x32xf32>
    %c25 = arith.constant 25 : index
    %c0_126 = arith.constant 0 : index
    %170 = vector.load %arg3[%c25, %c0_126] : memref<28x32xf32, #tpu.memory_space<vmem>>, vector<1x32xf32>
    %171 = vector.broadcast %170 : vector<1x32xf32> to vector<48x32xf32>
    %172 = arith.addf %169, %171 : vector<48x32xf32>
    %173 = arith.addf %172, %134 : vector<48x32xf32>
    %c10_127 = arith.constant 10 : index
    %c0_128 = arith.constant 0 : index
    %c0_129 = arith.constant 0 : index
    %174 = vector.load %arg2[%c10_127, %c0_128, %c0_129] : memref<12x96x32xbf16, #tpu.memory_space<vmem>>, vector<1x32x32xbf16>
    %175 = vector.shape_cast %174 : vector<1x32x32xbf16> to vector<32x32xbf16>
    %176 = arith.truncf %173 : vector<48x32xf32> to vector<48x32xbf16>
    %cst_130 = arith.constant dense<0.000000e+00> : vector<48x32xf32>
    %177 = tpu.matmul %176, %175, %cst_130 {dimension_numbers = #tpu.dot_dimension_numbers<[1], [0], [0], [1], [0, 0, 1, 1], [], []>} : vector<48x32xbf16>, vector<32x32xbf16>, vector<48x32xf32> -> vector<48x32xf32>
    %178 = arith.addf %17, %177 : vector<48x32xf32>
    %c26 = arith.constant 26 : index
    %c0_131 = arith.constant 0 : index
    %179 = vector.load %arg3[%c26, %c0_131] : memref<28x32xf32, #tpu.memory_space<vmem>>, vector<1x32xf32>
    %180 = vector.broadcast %179 : vector<1x32xf32> to vector<48x32xf32>
    %181 = arith.addf %178, %180 : vector<48x32xf32>
    %c11_132 = arith.constant 11 : index
    %c0_133 = arith.constant 0 : index
    %c0_134 = arith.constant 0 : index
    %182 = vector.load %arg2[%c11_132, %c0_133, %c0_134] : memref<12x96x32xbf16, #tpu.memory_space<vmem>>, vector<1x32x32xbf16>
    %183 = vector.shape_cast %182 : vector<1x32x32xbf16> to vector<32x32xbf16>
    %184 = arith.truncf %181 : vector<48x32xf32> to vector<48x32xbf16>
    %cst_135 = arith.constant dense<0.000000e+00> : vector<48x32xf32>
    %185 = tpu.matmul %184, %183, %cst_135 {dimension_numbers = #tpu.dot_dimension_numbers<[1], [0], [0], [1], [0, 0, 1, 1], [], []>} : vector<48x32xbf16>, vector<32x32xbf16>, vector<48x32xf32> -> vector<48x32xf32>
    %186 = vector.extract_strided_slice %185 {offsets = [0, 0], sizes = [48, 3], strides = [1, 1]} : vector<48x32xf32> to vector<48x3xf32>
    %c27 = arith.constant 27 : index
    %c0_136 = arith.constant 0 : index
    %187 = vector.load %arg3[%c27, %c0_136] : memref<28x32xf32, #tpu.memory_space<vmem>>, vector<1x32xf32>
    %188 = vector.extract_strided_slice %187 {offsets = [0, 0], sizes = [1, 3], strides = [1, 1]} : vector<1x32xf32> to vector<1x3xf32>
    %189 = vector.broadcast %188 : vector<1x3xf32> to vector<48x3xf32>
    %190 = arith.addf %186, %189 : vector<48x3xf32>
    %c0_137 = arith.constant 0 : index
    %c0_138 = arith.constant 0 : index
    %c0_139 = arith.constant 0 : index
    %191 = vector.load %arg4[%c0_137, %c0_138, %c0_139] : memref<1x48x3xf32, #tpu.memory_space<vmem>>, vector<1x48x3xf32>
    %192 = vector.shape_cast %191 : vector<1x48x3xf32> to vector<48x3xf32>
    %193 = vector.shape_cast %190 : vector<48x3xf32> to vector<1x48x3xf32>
    tpu.vector_store %arg4[%c0_137, %c0_138, %c0_139], %193 {strides = array<i32>} : memref<1x48x3xf32, #tpu.memory_space<vmem>>, vector<1x48x3xf32>,
    return
  }
  func.func @transform_0(%arg0: i32) -> (i32, i32, i32) {
    %c0_i32 = arith.constant 0 : i32
    %c0_i32_0 = arith.constant 0 : i32
    %c0_i32_1 = arith.constant 0 : i32
    return %arg0, %c0_i32, %c0_i32_0 : i32, i32, i32
  }
  func.func @transform_1(%arg0: i32) -> (i32, i32, i32) {
    %c0_i32 = arith.constant 0 : i32
    %c0_i32_0 = arith.constant 0 : i32
    %c0_i32_1 = arith.constant 0 : i32
    %c0_i32_2 = arith.constant 0 : i32
    return %c0_i32, %c0_i32_0, %c0_i32_1 : i32, i32, i32
  }
  func.func @transform_2(%arg0: i32) -> (i32, i32) {
    %c0_i32 = arith.constant 0 : i32
    %c0_i32_0 = arith.constant 0 : i32
    %c0_i32_1 = arith.constant 0 : i32
    return %c0_i32, %c0_i32_0 : i32, i32
  }
  func.func @transform_3(%arg0: i32) -> (i32, i32, i32) {
    %c0_i32 = arith.constant 0 : i32
    %c0_i32_0 = arith.constant 0 : i32
    %c0_i32_1 = arith.constant 0 : i32
    return %arg0, %c0_i32, %c0_i32_0 : i32, i32, i32
  }
}

</mosaic_0001>

<bundles_post_ra>
// kernel: spliceai_forward.1
= control target key start
LH: loop header
LB: loop body
LE: loop exit
PB: predicated region body
PF: predicated region fallthrough
CT: control target
= control target key end

     0   :  { %s3397_s12 = smov 0   ;;  %s4161_s0 = inlined_call_operand.vmem [shape: f32[2,48,4], index: 0, kind: input, shape index: {}]   ;;  %s4162_s1 = inlined_call_operand.vmem [shape: bf16[12,96,32], index: 1, kind: input, shape index: {}]   ;;  %s4163_s2 = inlined_call_operand.vmem [shape: f32[28,32], index: 2, kind: input, shape index: {}]   ;;  %s4164_s3 = inlined_call_operand.vmem [shape: f32[2,48,3], index: 3, kind: output, shape index: {}]  }
   0x1 LB: > { %s2478_s13 = sadd.s32 4294967295, %s3371_s12   ;;  %p2482_p0 = scmp.ge.s32.totalorder %s3371_s12, 1  ;;  %s3371_s12 = sphi %s3397_s12, %s13_s12  }
   0x2   : > { %p137_p1 = scmp.lt.s32.totalorder %s3371_s12, 3 }
   0x4   : > { %p138_p2 = pnand %p2482_p0, %p137_p1 }
   0x5   : > { %v187_v0 = vld [vmem:[%s4162_s1] sm:$0x3] (!%p138_p2)  ;;  %vm206_vm0 = vcmask (!%p138_p2), 1041408   ;;  %p161_p3 = scmp.lt.s32.totalorder (!%p138_p2), %s2478_s13, 1  ;;  %v3373_v1 = vmov (!%p138_p2), 0.0   ;;  %vm3374_vm1 = vmmov (!%p138_p2), 0  }
   0x6   : > { %141 = sbr.rel (%p138_p2) target bundleno = 3563 (0xdeb), region = 32  ;;  %2804 = vmatprep.subr.bf16.mxu0 (!%p138_p2), %v3373_v1  ;;  %v208_v2 = vsel (!%p138_p2), %vm206_vm0, %v187_v0, 0  ;;  %2806 = vmatprep.mubr.msk.bf16.mxu0 (!%p138_p2), %vm3374_vm1, %v3373_v1  ;;  %vm196_vm2 = vcmask (!%p138_p2), 31744   ;;  %v3311_v12 = vld [vmem:[%s4162_s1 + $0x30] sm:$0xff] (!%p138_p2)   ;;  %v3312_v13 = vld [vmem:[%s4162_s1 + $0x38] sm:$0xff] (!%p138_p2)   ;;  %vm172_vm3 = vcmask (!%p138_p2), 261120  }
   0x7   : > { %2805 = vmatpush3.bf16.msra.mxu0 (!%p138_p2), %v208_v2  ;;  %2818 = vmatprep.subr.bf16.mxu1 (!%p138_p2), %v3373_v1  ;;  %173 = vst.msk [vmem:[#allocation2] sm:$0xff] (!%p138_p2), %vm172_vm3, %v3373_v1  ;;  %174 = vst.msk [vmem:[#allocation2 + $0x8] sm:$0xff] (!%p138_p2), %vm172_vm3, %v3373_v1  ;;  %vm179_vm4 = vcmask (!%p138_p2), 257024   ;;  %v3313_v14 = vld [vmem:[%s4162_s1 + $0x60] sm:$0xff] (!%p138_p2)   ;;  %v3314_v15 = vld [vmem:[%s4162_s1 + $0x68] sm:$0xff] (!%p138_p2)   ;;  %s3375_s15 = smov (!%p138_p2), 32  }
   0x8   : > { %2822 = vmatprep.mubr.msk.bf16.mxu1 (!%p138_p2), %vm3374_vm1, %v3373_v1  ;;  %2834 = vmatprep.subr.bf16.mxu0 (!%p138_p2), %v3373_v1  ;;  %175 = vst.msk [vmem:[#allocation2 + $0x10] sm:$0xff] (!%p138_p2), %vm172_vm3, %v3373_v1  ;;  %176 = vst.msk [vmem:[#allocation2 + $0x18] sm:$0xff] (!%p138_p2), %vm172_vm3, %v3373_v1  ;;  %v2485_v16 = vld [vmem:[%s4163_s2] ss:$0 sm:$0xff] (!%p138_p2)  ;;  %v2499_v18 = vld [vmem:[%s4163_s2 + $0x2] ss:$0 sm:$0xff] (!%p138_p2) }
   0x9   : > { %2819 = vmatpush3.bf16.msra.mxu1 (!%p138_p2), %v3311_v12  ;;  %177 = vst.msk [vmem:[#allocation2 + $0x20] sm:$0xff] (!%p138_p2), %vm172_vm3, %v3373_v1  ;;  %178 = vst.msk [vmem:[#allocation2 + $0x28] sm:$0xff] (!%p138_p2), %vm172_vm3, %v3373_v1  ;;  %v2500_v22 = vld [vmem:[%s4163_s2 + $0x3] ss:$0 sm:$0xff] (!%p138_p2)  ;;  %v3315_v23 = vld [vmem:[%s4162_s1 + $0x70] sm:$0xff] (!%p138_p2)   ;;  %vm458_vm5 = vcmask (!%p138_p2), 523264  }
   0xa   : > { %2820 = vmatprep.subr.bf16.mxu1 (!%p138_p2), %v3373_v1  ;;  %180 = vst.msk [vmem:[#allocation2 + $0x30] sm:$0xf] (!%p138_p2), %vm179_vm4, %v3373_v1  ;;  %v3316_v27 = vld [vmem:[%s4162_s1 + $0x78] sm:$0xff] (!%p138_p2)   ;;  %v3317_v38 = vld [vmem:[%s4162_s1 + $0x80] sm:$0xff] (!%p138_p2)   ;;  %v3318_v46 = vld [vmem:[%s4162_s1 + $0x88] sm:$0xff] (!%p138_p2)   ;;  %vm522_vm6 = vcmask (!%p138_p2), 785408  }
   0xb   : > { %vm2416_vm7 = vcmask (!%p138_p2), 23552  }
   0xd   : > { %s4166_s13 = smov (!%p161_p3, %s2478_s13), 1  ;;  %2821 = vmatpush3.bf16.msra.mxu1 %v3312_v13 }
   0xe   : > { %s3058_s16 = smul.u32 48, %s4166_s13  ;;  %2858 = vmatprep.subr.bf16.mxu1 %v3373_v1 }
  0x10   : > { %s165_s19 = scalar_lea.vmem %s4161_s0, %s3058_s16  ;;  %s170_s30 = scalar_lea.vmem %s4164_s3, %s3058_s16 }
  0x11   : > { %v181_v3 = vld [vmem:[%s165_s19] sm:$0xff]  ;;  %v182_v4 = vld [vmem:[%s165_s19 + $0x8] sm:$0xff]  ;;  %v183_v6 = vld [vmem:[%s165_s19 + $0x10] sm:$0xff] }
  0x12   : > { %v188_v5 = vpack.c.bf16 %v182_v4, %v181_v3  ;;  %v184_v7 = vld [vmem:[%s165_s19 + $0x18] sm:$0xff]  ;;  %v185_v9 = vld [vmem:[%s165_s19 + $0x20] sm:$0xff]  ;;  %v186_v10 = vld [vmem:[%s165_s19 + $0x28] sm:$0xff]  ;;  %s3376_s19 = smov 64  }
  0x13   : > { %v189_v8 = vpack.c.bf16 %v184_v7, %v183_v6  ;;  %v190_v11 = vpack.c.bf16 %v186_v10, %v185_v9 }
  0x14   : > { %2807 = vmatmul.mubr.msk.bf16.vlgmr.msra.gmra.mrb[0].mxu0 %vm196_vm2, %v188_v5 }
  0x15   : > { %2810 = vmatprep.mubr.msk.bf16.mxu0 %vm3374_vm1, %v3373_v1  ;;  %2835 = vmatpush3.bf16.msra.mxu0 %v3313_v14 }
  0x16   : > { %2836 = vmatprep.subr.bf16.mxu0 %v3373_v1 }
  0x19   : > { %2837 = vmatpush3.bf16.msra.mxu0 %v3314_v15 }
  0x1a   : > { %2838 = vmatprep.subr.bf16.mxu0 %v3373_v1 }
  0x1c   : > { %2811 = vmatmul.mubr.msk.bf16.gmra.mrb[4].mxu0 %vm196_vm2, %v189_v8 }
  0x1d   : > { %2814 = vmatprep.mubr.msk.bf16.mxu0 %vm3374_vm1, %v3373_v1  ;;  %2839 = vmatpush3.bf16.msra.mxu0 %v3315_v23 }
  0x1e   : > { %2840 = vmatprep.subr.bf16.mxu0 %v3373_v1 }
  0x21   : > { %2841 = vmatpush3.bf16.msra.mxu0 %v3316_v27 }
  0x22   : > { %2842 = vmatprep.subr.bf16.mxu0 %v3373_v1 }
  0x24   : > { %2815 = vmatmul.mubr.msk.bf16.gmra.mrb[8].mxu0 %vm196_vm2, %v190_v11 }
  0x25   : > { %2846 = vmatprep.mubr.msk.bf16.mxu0 %vm3374_vm1, %v3373_v1  ;;  %2843 = vmatpush3.bf16.msra.mxu0 %v3317_v38 }
  0x26   : > { %2844 = vmatprep.subr.bf16.mxu0 %v3373_v1 }
  0x29   : > { %2845 = vmatpush3.bf16.msra.mxu0 %v3318_v46 }
  0x2a   : > { %2882 = vmatprep.subr.bf16.mxu0 %v3373_v1 }
  0xe7   : > { %v244_v17 = vpop.f32.mrb[0].mxu0 }
  0xe8   : > { %v3464_v19 = vadd.f32 %v2485_v16, %v244_v17  ;;  %v2808_v20 = vpop.f32.mrb[1].mxu0 }
  0xe9   : > { %v247_v21 = vpop.f32.mrb[2].mxu0 }
  0xea   : > { %v363_v24 = vmul.f32 %v2499_v18, %v3464_v19  ;;  %v3473_v25 = vadd.f32 %v2485_v16, %v247_v21  ;;  %v2809_v26 = vpop.f32.mrb[3].mxu0 }
  0xec   : > { %v272_v28 = vpack.c.bf16 %v3473_v25, %v3464_v19  ;;  %v364_v29 = vmul.f32 %v2499_v18, %v3473_v25  ;;  %v374_v30 = vadd.f32 %v2500_v22, %v363_v24 }
  0xee   : > { %2823 = vmatmul.mubr.msk.bf16.vlgmr.msra.gmra.mrb[0].mxu1 %vm172_vm3, %v272_v28  ;;  %v375_v31 = vadd.f32 %v2500_v22, %v364_v29  ;;  %v380_v32 = vmax.f32 %v374_v30, 0.0 }
  0xef   : > { %v252_v33 = vpop.f32.mrb[4].mxu0  ;;  %2826 = vmatprep.mubr.msk.bf16.mxu1 %vm3374_vm1, %v3373_v1 }
  0xf0   : > { %v3485_v34 = vadd.f32 %v2485_v16, %v252_v33  ;;  %v2812_v35 = vpop.f32.mrb[5].mxu0  ;;  %v381_v36 = vmax.f32 %v375_v31, 0.0  ;;  %386 = vst.msk [vmem:[#allocation2 + $0x2] sm:$0xff] %vm172_vm3, %v380_v32 }
  0xf1   : > { %v255_v37 = vpop.f32.mrb[6].mxu0 }
  0xf2   : > { %v365_v39 = vmul.f32 %v2499_v18, %v3485_v34  ;;  %v3493_v40 = vadd.f32 %v2485_v16, %v255_v37  ;;  %v2813_v41 = vpop.f32.mrb[7].mxu0  ;;  %v3071_v42 = vpack.i.bf16 %v381_v36, %v380_v32  ;;  %387 = vst.msk [vmem:[#allocation2 + $0xa] sm:$0xff] %vm172_vm3, %v381_v36 }
  0xf4   : > { %v273_v43 = vpack.c.bf16 %v3493_v40, %v3485_v34  ;;  %v366_v44 = vmul.f32 %v2499_v18, %v3493_v40  ;;  %3072 = vrot.lane.b32.xlu0 %v3071_v42, %s3375_s15  ;;  %v376_v45 = vadd.f32 %v2500_v22, %v365_v39 }
  0xf6   : > { %2827 = vmatmul.mubr.msk.bf16.gmra.mrb[4].mxu1 %vm172_vm3, %v273_v43  ;;  %v377_v47 = vadd.f32 %v2500_v22, %v366_v44  ;;  %v382_v48 = vmax.f32 %v376_v45, 0.0 }
  0xf7   : > { %v260_v49 = vpop.f32.mrb[8].mxu0  ;;  %2830 = vmatprep.mubr.msk.bf16.mxu1 %vm3374_vm1, %v3373_v1 }
  0xf8   : > { %v3507_v50 = vadd.f32 %v2485_v16, %v260_v49  ;;  %v2816_v51 = vpop.f32.mrb[9].mxu0  ;;  %v383_v52 = vmax.f32 %v377_v47, 0.0  ;;  %388 = vst.msk [vmem:[#allocation2 + $0x12] sm:$0xff] %vm172_vm3, %v382_v48 }
  0xf9   : > { %v263_v53 = vpop.f32.mrb[10].mxu0  ;;  %v398_v63 = vld [vmem:[#allocation2 + $0x3] sm:$0xff] }
  0xfa   : > { %v367_v54 = vmul.f32 %v2499_v18, %v3507_v50  ;;  %v3512_v55 = vadd.f32 %v2485_v16, %v263_v53  ;;  %v2817_v56 = vpop.f32.mrb[11].mxu0  ;;  %v3081_v57 = vpack.i.bf16 %v383_v52, %v382_v48  ;;  %389 = vst.msk [vmem:[#allocation2 + $0x1a] sm:$0xff] %vm172_vm3, %v383_v52  ;;  %v393_v15 = vld [vmem:[#allocation2 + $0x9] sm:$0xff]  ;;  %v392_v16 = vld [vmem:[#allocation2 + $0x1] sm:$0xff] }
  0xfc   : > { %v274_v58 = vpack.c.bf16 %v3512_v55, %v3507_v50  ;;  %v368_v59 = vmul.f32 %v2499_v18, %v3512_v55  ;;  %3082 = vrot.lane.b32.xlu1 %v3081_v57, %s3375_s15  ;;  %v378_v60 = vadd.f32 %v2500_v22, %v367_v54 }
  0xfe   : > { %2831 = vmatmul.mubr.msk.bf16.gmra.mrb[8].mxu1 %vm172_vm3, %v274_v58  ;;  %v379_v61 = vadd.f32 %v2500_v22, %v368_v59  ;;  %v384_v62 = vmax.f32 %v378_v60, 0.0 }
  0xff   : > { %v399_v0 = vld [vmem:[#allocation2 + $0xb] sm:$0xff]  ;;  %2870 = vmatprep.mubr.msk.bf16.mxu1 %vm3374_vm1, %v3373_v1 }
 0x100   : > { %v3076_v2 = vpack.i.bf16 %v399_v0, %v398_v63  ;;  %v385_v3 = vmax.f32 %v379_v61, 0.0  ;;  %390 = vst.msk [vmem:[#allocation2 + $0x22] sm:$0xff] %vm172_vm3, %v384_v62  ;;  %v394_v30 = vld [vmem:[#allocation2 + $0x11] sm:$0xff] }
 0x101   : > { %v400_v5 = vld [vmem:[#allocation2 + $0x13] sm:$0xff] }
 0x102   : > { %3077 = vrot.lane.b32.xlu0 %v3076_v2, %s3376_s19  ;;  %391 = vst.msk [vmem:[#allocation2 + $0x2a] sm:$0xff] %vm172_vm3, %v385_v3  ;;  %v3091_v4 = vpack.i.bf16 %v385_v3, %v384_v62  ;;  %v395_v31 = vld [vmem:[#allocation2 + $0x19] sm:$0xff] }
 0x106   : > { %3092 = vrot.lane.b32.xlu0 %v3091_v4, %s3375_s15 }
 0x107   : > { %v401_v6 = vld [vmem:[#allocation2 + $0x1b] sm:$0xff] }
 0x108   : > { %v3086_v7 = vpack.i.bf16 %v401_v6, %v400_v5  ;;  %v396_v47 = vld [vmem:[#allocation2 + $0x21] sm:$0xff]  ;;  %v3319_v5 = vld [vmem:[%s4162_s1 + $0x90] sm:$0xff]   ;;  %v3320_v6 = vld [vmem:[%s4162_s1 + $0x98] sm:$0xff]  }
 0x109   : > { %v402_v8 = vld [vmem:[#allocation2 + $0x23] sm:$0xff]  ;;  %v403_v9 = vld [vmem:[#allocation2 + $0x2b] sm:$0xff]  ;;  %2859 = vmatpush3.bf16.msra.mxu1 %v3319_v5 }
 0x10a   : > { %3087 = vrot.lane.b32.xlu1 %v3086_v7, %s3376_s19  ;;  %v3096_v10 = vpack.i.bf16 %v403_v9, %v402_v8  ;;  %v397_v48 = vld [vmem:[#allocation2 + $0x29] sm:$0xff]  ;;  %2860 = vmatprep.subr.bf16.mxu1 %v3373_v1  ;;  %v2513_v7 = vld [vmem:[%s4163_s2 + $0x12] ss:$0 sm:$0xff]  ;;  %v2523_v9 = vld [vmem:[%s4163_s2 + $0x4] ss:$0 sm:$0xff] }
 0x10d   : > { %2861 = vmatpush3.bf16.msra.mxu1 %v3320_v6 }
 0x10e   : > { %3097 = vrot.lane.b32.xlu1 %v3096_v10, %s3376_s19  ;;  %2862 = vmatprep.subr.bf16.mxu1 %v3373_v1 }
 0x166   : > { %v3073_v11 = vpop.permute.xlu0 %3072 }
 0x167   : > { %v3075_v12 = vunpack.i.h.bf16 %v3073_v11  ;;  %v3074_v13 = vunpack.i.l.bf16 %v3073_v11 }
 0x169   : > { %v452_v20 = vsel %vm172_vm3, %v392_v16, %v3074_v13  ;;  %v453_v21 = vsel %vm172_vm3, %v393_v15, %v3075_v12  ;;  %v2524_v12 = vld [vmem:[%s4163_s2 + $0x5] ss:$0 sm:$0xff] }
 0x16e   : > { %v3083_v22 = vpop.permute.xlu1 %3082 }
 0x16f   : > { %v3085_v27 = vunpack.i.h.bf16 %v3083_v22  ;;  %v3084_v28 = vunpack.i.l.bf16 %v3083_v22 }
 0x171   : > { %v454_v36 = vsel %vm172_vm3, %v394_v30, %v3084_v28  ;;  %v455_v37 = vsel %vm172_vm3, %v395_v31, %v3085_v27  ;;  %v3323_v30 = vld [vmem:[%s4162_s1 + $0xb0] sm:$0xff]  }
 0x174   : > { %v3078_v14 = vpop.permute.xlu0 %3077 }
 0x175   : > { %v3080_v17 = vunpack.i.h.bf16 %v3078_v14  ;;  %v3079_v18 = vunpack.i.l.bf16 %v3078_v14  ;;  %v3321_v14 = vld [vmem:[%s4162_s1 + $0xa0] sm:$0xff]  }
 0x176   : > { %2863 = vmatpush3.bf16.msra.mxu1 %v3321_v14 }
 0x177   : > { %v460_v23 = vsel %vm458_vm5, %v453_v21, %v3080_v17  ;;  %v459_v24 = vsel %vm458_vm5, %v452_v20, %v3079_v18  ;;  %v3322_v18 = vld [vmem:[%s4162_s1 + $0xa8] sm:$0xff]   ;;  %2864 = vmatprep.subr.bf16.mxu1 %v3373_v1 }
 0x178   : > { %v478_v26 = vpack.c.bf16 %v460_v23, %v459_v24  ;;  %v3093_v32 = vpop.permute.xlu0 %3092 }
 0x179   : > { %v3095_v41 = vunpack.i.h.bf16 %v3093_v32  ;;  %v3094_v42 = vunpack.i.l.bf16 %v3093_v32 }
 0x17a   : > { %2847 = vmatmul.mubr.msk.bf16.vlgmr.msra.gmra.mrb[12].mxu0 %vm522_vm6, %v478_v26  ;;  %2865 = vmatpush3.bf16.msra.mxu1 %v3322_v18 }
 0x17b   : > { %2850 = vmatprep.mubr.msk.bf16.mxu0 %vm3374_vm1, %v3373_v1  ;;  %v456_v49 = vsel %vm172_vm3, %v396_v47, %v3094_v42  ;;  %v457_v51 = vsel %vm172_vm3, %v397_v48, %v3095_v41  ;;  %2866 = vmatprep.subr.bf16.mxu1 %v3373_v1 }
 0x17c   : > { %v3088_v29 = vpop.permute.xlu1 %3087 }
 0x17d   : > { %v3090_v33 = vunpack.i.h.bf16 %v3088_v29  ;;  %v3089_v35 = vunpack.i.l.bf16 %v3088_v29 }
 0x17e   : > { %2867 = vmatpush3.bf16.msra.mxu1 %v3323_v30 }
 0x17f   : > { %v462_v38 = vsel %vm458_vm5, %v455_v37, %v3090_v33  ;;  %v461_v39 = vsel %vm458_vm5, %v454_v36, %v3089_v35  ;;  %2868 = vmatprep.subr.bf16.mxu1 %v3373_v1 }
 0x180   : > { %v479_v43 = vpack.c.bf16 %v462_v38, %v461_v39  ;;  %v3098_v44 = vpop.permute.xlu1 %3097  ;;  %v3324_v38 = vld [vmem:[%s4162_s1 + $0xb8] sm:$0xff]  }
 0x181   : > { %v3100_v45 = vunpack.i.h.bf16 %v3098_v44  ;;  %v3099_v46 = vunpack.i.l.bf16 %v3098_v44 }
 0x182   : > { %2851 = vmatmul.mubr.msk.bf16.gmra.mrb[16].mxu0 %vm522_vm6, %v479_v43  ;;  %2869 = vmatpush3.bf16.msra.mxu1 %v3324_v38 }
 0x183   : > { %2854 = vmatprep.mubr.msk.bf16.mxu0 %vm3374_vm1, %v3373_v1  ;;  %v463_v52 = vsel %vm458_vm5, %v456_v49, %v3099_v46  ;;  %v464_v53 = vsel %vm458_vm5, %v457_v51, %v3100_v45  ;;  %2906 = vmatprep.subr.bf16.mxu1 %v3373_v1 }
 0x184   : > { %v480_v54 = vpack.c.bf16 %v464_v53, %v463_v52 }
 0x18a   : > { %2855 = vmatmul.mubr.msk.bf16.gmra.mrb[20].mxu0 %vm522_vm6, %v480_v54 }
 0x18b   : > { %2894 = vmatprep.mubr.msk.bf16.mxu0 %vm3374_vm1, %v3373_v1 }
 0x1c1   : > { %v3549_v56 = vpop.f32.mrb[0].mxu1 }
 0x1c2   : > { %v2824_v57 = vpop.f32.mrb[1].mxu1 }
 0x1c3   : > { %v3551_v58 = vpop.f32.mrb[2].mxu1 }
 0x1c4   : > { %v2825_v59 = vpop.f32.mrb[3].mxu1 }
 0x1c9   : > { %v3553_v60 = vpop.f32.mrb[4].mxu1 }
 0x1ca   : > { %v2828_v61 = vpop.f32.mrb[5].mxu1 }
 0x1cb   : > { %v3555_v62 = vpop.f32.mrb[6].mxu1 }
 0x1cc   : > { %v2829_v63 = vpop.f32.mrb[7].mxu1 }
 0x1d1   : > { %v3557_v0 = vpop.f32.mrb[8].mxu1 }
 0x1d2   : > { %v2832_v2 = vpop.f32.mrb[9].mxu1 }
 0x1d3   : > { %v3559_v3 = vpop.f32.mrb[10].mxu1 }
 0x1d4   : > { %v2833_v4 = vpop.f32.mrb[11].mxu1 }
 0x24d   : > { %v566_v8 = vpop.f32.mrb[12].mxu0 }
 0x24e   : > { %v567_v10 = vadd.f32 %v2513_v7, %v566_v8  ;;  %v2848_v11 = vpop.f32.mrb[13].mxu0 }
 0x24f   : > { %v569_v13 = vpop.f32.mrb[14].mxu0 }
 0x250   : > { %v594_v15 = vmul.f32 %v2523_v9, %v567_v10  ;;  %v570_v16 = vadd.f32 %v2513_v7, %v569_v13  ;;  %v2849_v17 = vpop.f32.mrb[15].mxu0 }
 0x252   : > { %v605_v20 = vadd.f32 %v2524_v12, %v594_v15  ;;  %v595_v21 = vmul.f32 %v2523_v9, %v570_v16 }
 0x254   : > { %v611_v22 = vmax.f32 %v605_v20, 0.0  ;;  %v606_v23 = vadd.f32 %v2524_v12, %v595_v21 }
 0x255   : > { %v574_v24 = vpop.f32.mrb[16].mxu0 }
 0x256   : > { %617 = vst.msk [vmem:[#allocation2 + $0x2] sm:$0xff] %vm172_vm3, %v611_v22  ;;  %v612_v26 = vmax.f32 %v606_v23, 0.0  ;;  %v575_v27 = vadd.f32 %v2513_v7, %v574_v24  ;;  %v2852_v28 = vpop.f32.mrb[17].mxu0 }
 0x257   : > { %v577_v29 = vpop.f32.mrb[18].mxu0 }
 0x258   : > { %618 = vst.msk [vmem:[#allocation2 + $0xa] sm:$0xff] %vm172_vm3, %v612_v26  ;;  %v596_v31 = vmul.f32 %v2523_v9, %v575_v27  ;;  %v578_v32 = vadd.f32 %v2513_v7, %v577_v29  ;;  %v2853_v33 = vpop.f32.mrb[19].mxu0  ;;  %v3101_v35 = vpack.i.bf16 %v612_v26, %v611_v22 }
 0x25a   : > { %v607_v36 = vadd.f32 %v2524_v12, %v596_v31  ;;  %v597_v37 = vmul.f32 %v2523_v9, %v578_v32  ;;  %3102 = vrot.lane.b32.xlu0 %v3101_v35, %s3375_s15 }
 0x25c   : > { %v613_v39 = vmax.f32 %v607_v36, 0.0  ;;  %v608_v41 = vadd.f32 %v2524_v12, %v597_v37 }
 0x25d   : > { %v582_v42 = vpop.f32.mrb[20].mxu0  ;;  %v623_v15 = vld [vmem:[#allocation2 + $0x1] sm:$0xff] }
 0x25e   : > { %619 = vst.msk [vmem:[#allocation2 + $0x12] sm:$0xff] %vm172_vm3, %v613_v39  ;;  %v614_v43 = vmax.f32 %v608_v41, 0.0  ;;  %v583_v44 = vadd.f32 %v2513_v7, %v582_v42  ;;  %v2856_v45 = vpop.f32.mrb[21].mxu0 }
 0x25f   : > { %v585_v46 = vpop.f32.mrb[22].mxu0  ;;  %v629_v59 = vld [vmem:[#allocation2 + $0x3] sm:$0xff] }
 0x260   : > { %620 = vst.msk [vmem:[#allocation2 + $0x1a] sm:$0xff] %vm172_vm3, %v614_v43  ;;  %v598_v47 = vmul.f32 %v2523_v9, %v583_v44  ;;  %v586_v48 = vadd.f32 %v2513_v7, %v585_v46  ;;  %v2857_v49 = vpop.f32.mrb[23].mxu0  ;;  %v3111_v51 = vpack.i.bf16 %v614_v43, %v613_v39  ;;  %v624_v16 = vld [vmem:[#allocation2 + $0x9] sm:$0xff] }
 0x262   : > { %v609_v52 = vadd.f32 %v2524_v12, %v598_v47  ;;  %v599_v53 = vmul.f32 %v2523_v9, %v586_v48  ;;  %3112 = vrot.lane.b32.xlu0 %v3111_v51, %s3375_s15 }
 0x264   : > { %v615_v54 = vmax.f32 %v609_v52, 0.0  ;;  %v610_v57 = vadd.f32 %v2524_v12, %v599_v53 }
 0x265   : > { %v630_v61 = vld [vmem:[#allocation2 + $0xb] sm:$0xff] }
 0x266   : > { %621 = vst.msk [vmem:[#allocation2 + $0x22] sm:$0xff] %vm172_vm3, %v615_v54  ;;  %v616_v63 = vmax.f32 %v610_v57, 0.0  ;;  %v3106_v2 = vpack.i.bf16 %v630_v61, %v629_v59  ;;  %v625_v30 = vld [vmem:[#allocation2 + $0x11] sm:$0xff]  ;;  %v3325_v57 = vld [vmem:[%s4162_s1 + $0xc0] sm:$0xff]   ;;  %v3326_v59 = vld [vmem:[%s4162_s1 + $0xc8] sm:$0xff]  }
 0x267   : > { %v631_v5 = vld [vmem:[#allocation2 + $0x13] sm:$0xff]  ;;  %2883 = vmatpush3.bf16.msra.mxu0 %v3325_v57 }
 0x268   : > { %622 = vst.msk [vmem:[#allocation2 + $0x2a] sm:$0xff] %vm172_vm3, %v616_v63  ;;  %3107 = vrot.lane.b32.xlu1 %v3106_v2, %s3376_s19  ;;  %v3121_v4 = vpack.i.bf16 %v616_v63, %v615_v54  ;;  %v626_v31 = vld [vmem:[#allocation2 + $0x19] sm:$0xff]  ;;  %2884 = vmatprep.subr.bf16.mxu0 %v3373_v1  ;;  %v2537_v61 = vld [vmem:[%s4163_s2 + $0x13] ss:$0 sm:$0xff] }
 0x26a   : > { %3122 = vrot.lane.b32.xlu0 %v3121_v4, %s3375_s15 }
 0x26b   : > { %2885 = vmatpush3.bf16.msra.mxu0 %v3326_v59 }
 0x26c   : > { %2886 = vmatprep.subr.bf16.mxu0 %v3373_v1 }
 0x26d   : > { %v632_v6 = vld [vmem:[#allocation2 + $0x1b] sm:$0xff] }
 0x26e   : > { %v3116_v7 = vpack.i.bf16 %v632_v6, %v631_v5  ;;  %v627_v47 = vld [vmem:[#allocation2 + $0x21] sm:$0xff] }
 0x26f   : > { %v633_v8 = vld [vmem:[#allocation2 + $0x23] sm:$0xff]  ;;  %v634_v9 = vld [vmem:[#allocation2 + $0x2b] sm:$0xff] }
 0x270   : > { %3117 = vrot.lane.b32.xlu1 %v3116_v7, %s3376_s19  ;;  %v3126_v10 = vpack.i.bf16 %v634_v9, %v633_v8  ;;  %v628_v48 = vld [vmem:[#allocation2 + $0x29] sm:$0xff]  ;;  %v2547_v5 = vld [vmem:[%s4163_s2 + $0x6] ss:$0 sm:$0xff] }
 0x274   : > { %3127 = vrot.lane.b32.xlu1 %v3126_v10, %s3376_s19  ;;  %v2548_v10 = vld [vmem:[%s4163_s2 + $0x7] ss:$0 sm:$0xff] }
 0x2cc   : > { %v3103_v11 = vpop.permute.xlu0 %3102 }
 0x2cd   : > { %v3105_v12 = vunpack.i.h.bf16 %v3103_v11  ;;  %v3104_v13 = vunpack.i.l.bf16 %v3103_v11  ;;  %v3327_v11 = vld [vmem:[%s4162_s1 + $0xd0] sm:$0xff]  }
 0x2ce   : > { %2887 = vmatpush3.bf16.msra.mxu0 %v3327_v11 }
 0x2cf   : > { %v683_v20 = vsel %vm172_vm3, %v623_v15, %v3104_v13  ;;  %v684_v21 = vsel %vm172_vm3, %v624_v16, %v3105_v12  ;;  %2888 = vmatprep.subr.bf16.mxu0 %v3373_v1 }
 0x2d4   : > { %v3113_v22 = vpop.permute.xlu0 %3112 }
 0x2d5   : > { %v3115_v27 = vunpack.i.h.bf16 %v3113_v22  ;;  %v3114_v28 = vunpack.i.l.bf16 %v3113_v22 }
 0x2d7   : > { %v685_v36 = vsel %vm172_vm3, %v625_v30, %v3114_v28  ;;  %v686_v37 = vsel %vm172_vm3, %v626_v31, %v3115_v27  ;;  %v3329_v27 = vld [vmem:[%s4162_s1 + $0xe0] sm:$0xff]  }
 0x2da   : > { %v3108_v14 = vpop.permute.xlu1 %3107 }
 0x2db   : > { %v3110_v17 = vunpack.i.h.bf16 %v3108_v14  ;;  %v3109_v18 = vunpack.i.l.bf16 %v3108_v14 }
 0x2dc   : > { %v3123_v32 = vpop.permute.xlu0 %3122 }
 0x2dd   : > { %v690_v23 = vsel %vm458_vm5, %v684_v21, %v3110_v17  ;;  %v689_v24 = vsel %vm458_vm5, %v683_v20, %v3109_v18  ;;  %v3125_v41 = vunpack.i.h.bf16 %v3123_v32  ;;  %v3124_v42 = vunpack.i.l.bf16 %v3123_v32 }
 0x2de   : > { %v708_v26 = vpack.c.bf16 %v690_v23, %v689_v24 }
 0x2df   : > { %v687_v49 = vsel %vm172_vm3, %v627_v47, %v3124_v42  ;;  %v688_v51 = vsel %vm172_vm3, %v628_v48, %v3125_v41 }
 0x2e0   : > { %2871 = vmatmul.mubr.msk.bf16.vlgmr.msra.gmra.mrb[12].mxu1 %vm522_vm6, %v708_v26 }
 0x2e1   : > { %2874 = vmatprep.mubr.msk.bf16.mxu1 %vm3374_vm1, %v3373_v1 }
 0x2e2   : > { %v3118_v29 = vpop.permute.xlu1 %3117 }
 0x2e3   : > { %v3120_v33 = vunpack.i.h.bf16 %v3118_v29  ;;  %v3119_v35 = vunpack.i.l.bf16 %v3118_v29 }
 0x2e5   : > { %v692_v38 = vsel %vm458_vm5, %v686_v37, %v3120_v33  ;;  %v691_v39 = vsel %vm458_vm5, %v685_v36, %v3119_v35  ;;  %v3330_v33 = vld [vmem:[%s4162_s1 + $0xe8] sm:$0xff]  }
 0x2e6   : > { %v709_v43 = vpack.c.bf16 %v692_v38, %v691_v39  ;;  %v3128_v44 = vpop.permute.xlu1 %3127 }
 0x2e7   : > { %v3130_v45 = vunpack.i.h.bf16 %v3128_v44  ;;  %v3129_v46 = vunpack.i.l.bf16 %v3128_v44 }
 0x2e8   : > { %2875 = vmatmul.mubr.msk.bf16.gmra.mrb[16].mxu1 %vm522_vm6, %v709_v43 }
 0x2e9   : > { %2878 = vmatprep.mubr.msk.bf16.mxu1 %vm3374_vm1, %v3373_v1  ;;  %v693_v52 = vsel %vm458_vm5, %v687_v49, %v3129_v46  ;;  %v694_v53 = vsel %vm458_vm5, %v688_v51, %v3130_v45 }
 0x2ea   : > { %v710_v54 = vpack.c.bf16 %v694_v53, %v693_v52 }
 0x2f0   : > { %2879 = vmatmul.mubr.msk.bf16.gmra.mrb[20].mxu1 %vm522_vm6, %v710_v54 }
 0x2f1   : > { %2918 = vmatprep.mubr.msk.bf16.mxu1 %vm3374_vm1, %v3373_v1 }
 0x3b3   : > { %v795_v63 = vpop.f32.mrb[12].mxu1 }
 0x3b4   : > { %v796_v2 = vadd.f32 %v2537_v61, %v795_v63  ;;  %v2872_v4 = vpop.f32.mrb[13].mxu1 }
 0x3b5   : > { %v798_v6 = vpop.f32.mrb[14].mxu1 }
 0x3b6   : > { %v3642_v7 = vadd.f32 %v796_v2, %v3464_v19  ;;  %v799_v8 = vadd.f32 %v2537_v61, %v798_v6  ;;  %v2873_v9 = vpop.f32.mrb[15].mxu1  ;;  %v3328_v19 = vld [vmem:[%s4162_s1 + $0xd8] sm:$0xff]  }
 0x3b7   : > { %2889 = vmatpush3.bf16.msra.mxu0 %v3328_v19 }
 0x3b8   : > { %v829_v12 = vmul.f32 %v2547_v5, %v3642_v7  ;;  %v3652_v13 = vadd.f32 %v799_v8, %v3473_v25  ;;  %2890 = vmatprep.subr.bf16.mxu0 %v3373_v1 }
 0x3ba   : > { %v830_v14 = vmul.f32 %v2547_v5, %v3652_v13  ;;  %v840_v15 = vadd.f32 %v2548_v10, %v829_v12 }
 0x3bb   : > { %v803_v16 = vpop.f32.mrb[16].mxu1  ;;  %2891 = vmatpush3.bf16.msra.mxu0 %v3329_v27 }
 0x3bc   : > { %v804_v17 = vadd.f32 %v2537_v61, %v803_v16  ;;  %v2876_v18 = vpop.f32.mrb[17].mxu1  ;;  %v841_v20 = vadd.f32 %v2548_v10, %v830_v14  ;;  %v846_v21 = vmax.f32 %v840_v15, 0.0  ;;  %2892 = vmatprep.subr.bf16.mxu0 %v3373_v1 }
 0x3bd   : > { %v806_v22 = vpop.f32.mrb[18].mxu1 }
 0x3be   : > { %v3660_v25 = vadd.f32 %v804_v17, %v3485_v34  ;;  %v807_v23 = vadd.f32 %v2537_v61, %v806_v22  ;;  %v2877_v24 = vpop.f32.mrb[19].mxu1  ;;  %v847_v26 = vmax.f32 %v841_v20, 0.0  ;;  %852 = vst.msk [vmem:[#allocation2 + $0x2] sm:$0xff] %vm172_vm3, %v846_v21 }
 0x3bf   : > { %2893 = vmatpush3.bf16.msra.mxu0 %v3330_v33 }
 0x3c0   : > { %v831_v28 = vmul.f32 %v2547_v5, %v3660_v25  ;;  %v3669_v29 = vadd.f32 %v807_v23, %v3493_v40  ;;  %v3131_v30 = vpack.i.bf16 %v847_v26, %v846_v21  ;;  %853 = vst.msk [vmem:[#allocation2 + $0xa] sm:$0xff] %vm172_vm3, %v847_v26  ;;  %2930 = vmatprep.subr.bf16.mxu0 %v3373_v1 }
 0x3c2   : > { %v832_v34 = vmul.f32 %v2547_v5, %v3669_v29  ;;  %3132 = vrot.lane.b32.xlu0 %v3131_v30, %s3375_s15  ;;  %v842_v31 = vadd.f32 %v2548_v10, %v831_v28 }
 0x3c3   : > { %v811_v32 = vpop.f32.mrb[20].mxu1 }
 0x3c4   : > { %v812_v35 = vadd.f32 %v2537_v61, %v811_v32  ;;  %v2880_v36 = vpop.f32.mrb[21].mxu1  ;;  %v843_v40 = vadd.f32 %v2548_v10, %v832_v34  ;;  %v848_v37 = vmax.f32 %v842_v31, 0.0 }
 0x3c5   : > { %v814_v38 = vpop.f32.mrb[22].mxu1 }
 0x3c6   : > { %v3679_v39 = vadd.f32 %v812_v35, %v3507_v50  ;;  %v815_v41 = vadd.f32 %v2537_v61, %v814_v38  ;;  %v2881_v42 = vpop.f32.mrb[23].mxu1  ;;  %v849_v43 = vmax.f32 %v843_v40, 0.0  ;;  %854 = vst.msk [vmem:[#allocation2 + $0x12] sm:$0xff] %vm172_vm3, %v848_v37 }
 0x3c7   : > { %v864_v51 = vld [vmem:[#allocation2 + $0x3] sm:$0xff] }
 0x3c8   : > { %v833_v44 = vmul.f32 %v2547_v5, %v3679_v39  ;;  %v3685_v45 = vadd.f32 %v815_v41, %v3512_v55  ;;  %v3141_v46 = vpack.i.bf16 %v849_v43, %v848_v37  ;;  %855 = vst.msk [vmem:[#allocation2 + $0x1a] sm:$0xff] %vm172_vm3, %v849_v43  ;;  %v859_v11 = vld [vmem:[#allocation2 + $0x9] sm:$0xff] }
 0x3ca   : > { %v834_v47 = vmul.f32 %v2547_v5, %v3685_v45  ;;  %3142 = vrot.lane.b32.xlu0 %v3141_v46, %s3375_s15  ;;  %v844_v50 = vadd.f32 %v2548_v10, %v833_v44 }
 0x3cc   : > { %v845_v48 = vadd.f32 %v2548_v10, %v834_v47  ;;  %v850_v49 = vmax.f32 %v844_v50, 0.0  ;;  %v858_v10 = vld [vmem:[#allocation2 + $0x1] sm:$0xff] }
 0x3cd   : > { %v865_v52 = vld [vmem:[#allocation2 + $0xb] sm:$0xff] }
 0x3ce   : > { %v3136_v53 = vpack.i.bf16 %v865_v52, %v864_v51  ;;  %v851_v54 = vmax.f32 %v845_v48, 0.0  ;;  %856 = vst.msk [vmem:[#allocation2 + $0x22] sm:$0xff] %vm172_vm3, %v850_v49  ;;  %v860_v24 = vld [vmem:[#allocation2 + $0x11] sm:$0xff] }
 0x3cf   : > { %v866_v57 = vld [vmem:[#allocation2 + $0x13] sm:$0xff] }
 0x3d0   : > { %3137 = vrot.lane.b32.xlu1 %v3136_v53, %s3376_s19  ;;  %v3151_v55 = vpack.i.bf16 %v851_v54, %v850_v49  ;;  %857 = vst.msk [vmem:[#allocation2 + $0x2a] sm:$0xff] %vm172_vm3, %v851_v54  ;;  %v861_v26 = vld [vmem:[#allocation2 + $0x19] sm:$0xff]  ;;  %v3331_v49 = vld [vmem:[%s4162_s1 + $0xf0] sm:$0xff]   ;;  %v2571_v54 = vld [vmem:[%s4163_s2 + $0x8] ss:$0 sm:$0xff] }
 0x3d1   : > { %2907 = vmatpush3.bf16.msra.mxu1 %v3331_v49  ;;  %v3332_v51 = vld [vmem:[%s4162_s1 + $0xf8] sm:$0xff]   ;;  %v2561_v52 = vld [vmem:[%s4163_s2 + $0x14] ss:$0 sm:$0xff] }
 0x3d2   : > { %3152 = vrot.lane.b32.xlu0 %v3151_v55, %s3375_s15  ;;  %2908 = vmatprep.subr.bf16.mxu1 %v3373_v1 }
 0x3d5   : > { %v867_v59 = vld [vmem:[#allocation2 + $0x1b] sm:$0xff]  ;;  %2909 = vmatpush3.bf16.msra.mxu1 %v3332_v51 }
 0x3d6   : > { %v3146_v61 = vpack.i.bf16 %v867_v59, %v866_v57  ;;  %v862_v42 = vld [vmem:[#allocation2 + $0x21] sm:$0xff]  ;;  %2910 = vmatprep.subr.bf16.mxu1 %v3373_v1  ;;  %v2572_v59 = vld [vmem:[%s4163_s2 + $0x9] ss:$0 sm:$0xff] }
 0x3d7   : > { %v868_v63 = vld [vmem:[#allocation2 + $0x23] sm:$0xff]  ;;  %v869_v2 = vld [vmem:[#allocation2 + $0x2b] sm:$0xff] }
 0x3d8   : > { %3147 = vrot.lane.b32.xlu1 %v3146_v61, %s3376_s19  ;;  %v3156_v4 = vpack.i.bf16 %v869_v2, %v868_v63  ;;  %v863_v43 = vld [vmem:[#allocation2 + $0x29] sm:$0xff]  ;;  %v3333_v63 = vld [vmem:[%s4162_s1 + $0x100] sm:$0xff]  }
 0x3d9   : > { %2911 = vmatpush3.bf16.msra.mxu1 %v3333_v63 }
 0x3da   : > { %2912 = vmatprep.subr.bf16.mxu1 %v3373_v1 }
 0x3dc   : > { %3157 = vrot.lane.b32.xlu1 %v3156_v4, %s3376_s19 }
 0x434   : > { %v3133_v5 = vpop.permute.xlu0 %3132 }
 0x435   : > { %v3135_v6 = vunpack.i.h.bf16 %v3133_v5  ;;  %v3134_v8 = vunpack.i.l.bf16 %v3133_v5 }
 0x437   : > { %v919_v14 = vsel %vm172_vm3, %v859_v11, %v3135_v6  ;;  %v918_v15 = vsel %vm172_vm3, %v858_v10, %v3134_v8  ;;  %v3334_v6 = vld [vmem:[%s4162_s1 + $0x108] sm:$0xff]  }
 0x438   : > { %2913 = vmatpush3.bf16.msra.mxu1 %v3334_v6 }
 0x439   : > { %2914 = vmatprep.subr.bf16.mxu1 %v3373_v1 }
 0x43c   : > { %v3143_v16 = vpop.permute.xlu0 %3142 }
 0x43d   : > { %v3145_v21 = vunpack.i.h.bf16 %v3143_v16  ;;  %v3144_v22 = vunpack.i.l.bf16 %v3143_v16 }
 0x43f   : > { %v921_v34 = vsel %vm172_vm3, %v861_v26, %v3145_v21  ;;  %v920_v31 = vsel %vm172_vm3, %v860_v24, %v3144_v22  ;;  %v3336_v26 = vld [vmem:[%s4162_s1 + $0x118] sm:$0xff]  }
 0x442   : > { %v3138_v9 = vpop.permute.xlu1 %3137 }
 0x443   : > { %v3140_v12 = vunpack.i.h.bf16 %v3138_v9  ;;  %v3139_v19 = vunpack.i.l.bf16 %v3138_v9 }
 0x444   : > { %v3153_v27 = vpop.permute.xlu0 %3152 }
 0x445   : > { %v925_v17 = vsel %vm458_vm5, %v919_v14, %v3140_v12  ;;  %v924_v18 = vsel %vm458_vm5, %v918_v15, %v3139_v19  ;;  %v3155_v35 = vunpack.i.h.bf16 %v3153_v27  ;;  %v3154_v36 = vunpack.i.l.bf16 %v3153_v27 }
 0x446   : > { %v943_v20 = vpack.c.bf16 %v925_v17, %v924_v18  ;;  %v3335_v17 = vld [vmem:[%s4162_s1 + $0x110] sm:$0xff]  }
 0x447   : > { %v922_v44 = vsel %vm172_vm3, %v862_v42, %v3154_v36  ;;  %v923_v46 = vsel %vm172_vm3, %v863_v43, %v3155_v35  ;;  %2915 = vmatpush3.bf16.msra.mxu1 %v3335_v17 }
 0x448   : > { %2895 = vmatmul.mubr.msk.bf16.vlgmr.msra.gmra.mrb[24].mxu0 %vm522_vm6, %v943_v20  ;;  %2916 = vmatprep.subr.bf16.mxu1 %v3373_v1 }
 0x449   : > { %2898 = vmatprep.mubr.msk.bf16.mxu0 %vm3374_vm1, %v3373_v1 }
 0x44a   : > { %v3148_v23 = vpop.permute.xlu1 %3147 }
 0x44b   : > { %v3150_v28 = vunpack.i.h.bf16 %v3148_v23  ;;  %v3149_v30 = vunpack.i.l.bf16 %v3148_v23  ;;  %2917 = vmatpush3.bf16.msra.mxu1 %v3336_v26 }
 0x44c   : > { %2954 = vmatprep.subr.bf16.mxu1 %v3373_v1 }
 0x44d   : > { %v927_v32 = vsel %vm458_vm5, %v921_v34, %v3150_v28  ;;  %v926_v33 = vsel %vm458_vm5, %v920_v31, %v3149_v30 }
 0x44e   : > { %v944_v40 = vpack.c.bf16 %v927_v32, %v926_v33  ;;  %v3158_v37 = vpop.permute.xlu1 %3157 }
 0x44f   : > { %v3160_v38 = vunpack.i.h.bf16 %v3158_v37  ;;  %v3159_v41 = vunpack.i.l.bf16 %v3158_v37 }
 0x450   : > { %2899 = vmatmul.mubr.msk.bf16.gmra.mrb[28].mxu0 %vm522_vm6, %v944_v40 }
 0x451   : > { %2902 = vmatprep.mubr.msk.bf16.mxu0 %vm3374_vm1, %v3373_v1  ;;  %v928_v47 = vsel %vm458_vm5, %v922_v44, %v3159_v41  ;;  %v929_v50 = vsel %vm458_vm5, %v923_v46, %v3160_v38 }
 0x452   : > { %v945_v48 = vpack.c.bf16 %v929_v50, %v928_v47 }
 0x458   : > { %2903 = vmatmul.mubr.msk.bf16.gmra.mrb[32].mxu0 %vm522_vm6, %v945_v48 }
 0x459   : > { %2942 = vmatprep.mubr.msk.bf16.mxu0 %vm3374_vm1, %v3373_v1 }
 0x51b   : > { %v1030_v53 = vpop.f32.mrb[24].mxu0 }
 0x51c   : > { %v1031_v55 = vadd.f32 %v2561_v52, %v1030_v53  ;;  %v2896_v57 = vpop.f32.mrb[25].mxu0 }
 0x51d   : > { %v1033_v61 = vpop.f32.mrb[26].mxu0 }
 0x51e   : > { %v1058_v2 = vmul.f32 %v2571_v54, %v1031_v55  ;;  %v1034_v4 = vadd.f32 %v2561_v52, %v1033_v61  ;;  %v2897_v5 = vpop.f32.mrb[27].mxu0 }
 0x520   : > { %v1069_v8 = vadd.f32 %v2572_v59, %v1058_v2  ;;  %v1059_v9 = vmul.f32 %v2571_v54, %v1034_v4 }
 0x522   : > { %v1075_v10 = vmax.f32 %v1069_v8, 0.0  ;;  %v1070_v11 = vadd.f32 %v2572_v59, %v1059_v9 }
 0x523   : > { %v1038_v12 = vpop.f32.mrb[28].mxu0 }
 0x524   : > { %1081 = vst.msk [vmem:[#allocation2 + $0x2] sm:$0xff] %vm172_vm3, %v1075_v10  ;;  %v1076_v19 = vmax.f32 %v1070_v11, 0.0  ;;  %v1039_v14 = vadd.f32 %v2561_v52, %v1038_v12  ;;  %v2900_v15 = vpop.f32.mrb[29].mxu0 }
 0x525   : > { %v1041_v16 = vpop.f32.mrb[30].mxu0 }
 0x526   : > { %1082 = vst.msk [vmem:[#allocation2 + $0xa] sm:$0xff] %vm172_vm3, %v1076_v19  ;;  %v1060_v18 = vmul.f32 %v2571_v54, %v1039_v14  ;;  %v1042_v20 = vadd.f32 %v2561_v52, %v1041_v16  ;;  %v2901_v21 = vpop.f32.mrb[31].mxu0  ;;  %v3161_v22 = vpack.i.bf16 %v1076_v19, %v1075_v10 }
 0x528   : > { %v1071_v23 = vadd.f32 %v2572_v59, %v1060_v18  ;;  %v1061_v24 = vmul.f32 %v2571_v54, %v1042_v20  ;;  %3162 = vrot.lane.b32.xlu0 %v3161_v22, %s3375_s15 }
 0x52a   : > { %v1077_v27 = vmax.f32 %v1071_v23, 0.0  ;;  %v1072_v28 = vadd.f32 %v2572_v59, %v1061_v24 }
 0x52b   : > { %v1046_v30 = vpop.f32.mrb[32].mxu0  ;;  %v1087_v2 = vld [vmem:[#allocation2 + $0x1] sm:$0xff] }
 0x52c   : > { %1083 = vst.msk [vmem:[#allocation2 + $0x12] sm:$0xff] %vm172_vm3, %v1077_v27  ;;  %v1078_v34 = vmax.f32 %v1072_v28, 0.0  ;;  %v1047_v31 = vadd.f32 %v2561_v52, %v1046_v30  ;;  %v2904_v32 = vpop.f32.mrb[33].mxu0 }
 0x52d   : > { %v1049_v33 = vpop.f32.mrb[34].mxu0  ;;  %v1093_v44 = vld [vmem:[#allocation2 + $0x3] sm:$0xff] }
 0x52e   : > { %1084 = vst.msk [vmem:[#allocation2 + $0x1a] sm:$0xff] %vm172_vm3, %v1078_v34  ;;  %v1062_v35 = vmul.f32 %v2571_v54, %v1047_v31  ;;  %v1050_v36 = vadd.f32 %v2561_v52, %v1049_v33  ;;  %v2905_v40 = vpop.f32.mrb[35].mxu0  ;;  %v3171_v37 = vpack.i.bf16 %v1078_v34, %v1077_v27  ;;  %v1088_v4 = vld [vmem:[#allocation2 + $0x9] sm:$0xff] }
 0x530   : > { %v1073_v38 = vadd.f32 %v2572_v59, %v1062_v35  ;;  %v1063_v41 = vmul.f32 %v2571_v54, %v1050_v36  ;;  %3172 = vrot.lane.b32.xlu0 %v3171_v37, %s3375_s15 }
 0x532   : > { %v1079_v42 = vmax.f32 %v1073_v38, 0.0  ;;  %v1074_v43 = vadd.f32 %v2572_v59, %v1063_v41 }
 0x533   : > { %v1094_v46 = vld [vmem:[#allocation2 + $0xb] sm:$0xff] }
 0x534   : > { %1085 = vst.msk [vmem:[#allocation2 + $0x22] sm:$0xff] %vm172_vm3, %v1079_v42  ;;  %v1080_v47 = vmax.f32 %v1074_v43, 0.0  ;;  %v3166_v50 = vpack.i.bf16 %v1094_v46, %v1093_v44  ;;  %v1089_v17 = vld [vmem:[#allocation2 + $0x11] sm:$0xff]  ;;  %v3337_v43 = vld [vmem:[%s4162_s1 + $0x120] sm:$0xff]   ;;  %v3338_v44 = vld [vmem:[%s4162_s1 + $0x128] sm:$0xff]  }
 0x535   : > { %v1095_v49 = vld [vmem:[#allocation2 + $0x13] sm:$0xff]  ;;  %2931 = vmatpush3.bf16.msra.mxu0 %v3337_v43 }
 0x536   : > { %1086 = vst.msk [vmem:[#allocation2 + $0x2a] sm:$0xff] %vm172_vm3, %v1080_v47  ;;  %3167 = vrot.lane.b32.xlu1 %v3166_v50, %s3376_s19  ;;  %v3181_v48 = vpack.i.bf16 %v1080_v47, %v1079_v42  ;;  %v1090_v18 = vld [vmem:[#allocation2 + $0x19] sm:$0xff]  ;;  %2932 = vmatprep.subr.bf16.mxu0 %v3373_v1  ;;  %v2585_v46 = vld [vmem:[%s4163_s2 + $0x15] ss:$0 sm:$0xff] }
 0x538   : > { %3182 = vrot.lane.b32.xlu0 %v3181_v48, %s3375_s15 }
 0x539   : > { %2933 = vmatpush3.bf16.msra.mxu0 %v3338_v44 }
 0x53a   : > { %2934 = vmatprep.subr.bf16.mxu0 %v3373_v1 }
 0x53b   : > { %v1096_v51 = vld [vmem:[#allocation2 + $0x1b] sm:$0xff] }
 0x53c   : > { %v3176_v52 = vpack.i.bf16 %v1096_v51, %v1095_v49  ;;  %v1091_v35 = vld [vmem:[#allocation2 + $0x21] sm:$0xff]  ;;  %v2595_v49 = vld [vmem:[%s4163_s2 + $0xa] ss:$0 sm:$0xff] }
 0x53d   : > { %v1097_v53 = vld [vmem:[#allocation2 + $0x23] sm:$0xff]  ;;  %v1098_v54 = vld [vmem:[#allocation2 + $0x2b] sm:$0xff] }
 0x53e   : > { %3177 = vrot.lane.b32.xlu1 %v3176_v52, %s3376_s19  ;;  %v3186_v55 = vpack.i.bf16 %v1098_v54, %v1097_v53  ;;  %v1092_v36 = vld [vmem:[#allocation2 + $0x29] sm:$0xff] }
 0x542   : > { %3187 = vrot.lane.b32.xlu1 %v3186_v55, %s3376_s19  ;;  %v2596_v55 = vld [vmem:[%s4163_s2 + $0xb] ss:$0 sm:$0xff] }
 0x59a   : > { %v3163_v57 = vpop.permute.xlu0 %3162 }
 0x59b   : > { %v3165_v59 = vunpack.i.h.bf16 %v3163_v57  ;;  %v3164_v61 = vunpack.i.l.bf16 %v3163_v57  ;;  %v3339_v57 = vld [vmem:[%s4162_s1 + $0x130] sm:$0xff]  }
 0x59c   : > { %2935 = vmatpush3.bf16.msra.mxu0 %v3339_v57 }
 0x59d   : > { %v1147_v8 = vsel %vm172_vm3, %v1087_v2, %v3164_v61  ;;  %v1148_v9 = vsel %vm172_vm3, %v1088_v4, %v3165_v59  ;;  %2936 = vmatprep.subr.bf16.mxu0 %v3373_v1 }
 0x5a2   : > { %v3173_v10 = vpop.permute.xlu0 %3172 }
 0x5a3   : > { %v3175_v14 = vunpack.i.h.bf16 %v3173_v10  ;;  %v3174_v15 = vunpack.i.l.bf16 %v3173_v10 }
 0x5a5   : > { %v1149_v23 = vsel %vm172_vm3, %v1089_v17, %v3174_v15  ;;  %v1150_v24 = vsel %vm172_vm3, %v1090_v18, %v3175_v14  ;;  %v3341_v14 = vld [vmem:[%s4162_s1 + $0x140] sm:$0xff]  }
 0x5a8   : > { %v3168_v63 = vpop.permute.xlu1 %3167 }
 0x5a9   : > { %v3170_v5 = vunpack.i.h.bf16 %v3168_v63  ;;  %v3169_v6 = vunpack.i.l.bf16 %v3168_v63 }
 0x5aa   : > { %v3183_v20 = vpop.permute.xlu0 %3182 }
 0x5ab   : > { %v1154_v11 = vsel %vm458_vm5, %v1148_v9, %v3170_v5  ;;  %v1153_v12 = vsel %vm458_vm5, %v1147_v8, %v3169_v6  ;;  %v3185_v28 = vunpack.i.h.bf16 %v3183_v20  ;;  %v3184_v30 = vunpack.i.l.bf16 %v3183_v20 }
 0x5ac   : > { %v1172_v19 = vpack.c.bf16 %v1154_v11, %v1153_v12 }
 0x5ad   : > { %v1151_v40 = vsel %vm172_vm3, %v1091_v35, %v3184_v30  ;;  %v1152_v37 = vsel %vm172_vm3, %v1092_v36, %v3185_v28 }
 0x5ae   : > { %2919 = vmatmul.mubr.msk.bf16.vlgmr.msra.gmra.mrb[24].mxu1 %vm522_vm6, %v1172_v19 }
 0x5af   : > { %2922 = vmatprep.mubr.msk.bf16.mxu1 %vm3374_vm1, %v3373_v1 }
 0x5b0   : > { %v3178_v16 = vpop.permute.xlu1 %3177 }
 0x5b1   : > { %v3180_v21 = vunpack.i.h.bf16 %v3178_v16  ;;  %v3179_v22 = vunpack.i.l.bf16 %v3178_v16 }
 0x5b3   : > { %v1156_v26 = vsel %vm458_vm5, %v1150_v24, %v3180_v21  ;;  %v1155_v27 = vsel %vm458_vm5, %v1149_v23, %v3179_v22  ;;  %v3342_v21 = vld [vmem:[%s4162_s1 + $0x148] sm:$0xff]  }
 0x5b4   : > { %v1173_v34 = vpack.c.bf16 %v1156_v26, %v1155_v27  ;;  %v3188_v31 = vpop.permute.xlu1 %3187 }
 0x5b5   : > { %v3190_v32 = vunpack.i.h.bf16 %v3188_v31  ;;  %v3189_v33 = vunpack.i.l.bf16 %v3188_v31 }
 0x5b6   : > { %2923 = vmatmul.mubr.msk.bf16.gmra.mrb[28].mxu1 %vm522_vm6, %v1173_v34 }
 0x5b7   : > { %2926 = vmatprep.mubr.msk.bf16.mxu1 %vm3374_vm1, %v3373_v1  ;;  %v1157_v38 = vsel %vm458_vm5, %v1151_v40, %v3189_v33  ;;  %v1158_v41 = vsel %vm458_vm5, %v1152_v37, %v3190_v32 }
 0x5b8   : > { %v1174_v42 = vpack.c.bf16 %v1158_v41, %v1157_v38 }
 0x5be   : > { %2927 = vmatmul.mubr.msk.bf16.gmra.mrb[32].mxu1 %vm522_vm6, %v1174_v42 }
 0x5bf   : > { %2966 = vmatprep.mubr.msk.bf16.mxu1 %vm3374_vm1, %v3373_v1 }
 0x681   : > { %v1259_v47 = vpop.f32.mrb[24].mxu1 }
 0x682   : > { %v1260_v50 = vadd.f32 %v2585_v46, %v1259_v47  ;;  %v2920_v48 = vpop.f32.mrb[25].mxu1 }
 0x683   : > { %v1262_v51 = vpop.f32.mrb[26].mxu1 }
 0x684   : > { %v3798_v52 = vadd.f32 %v1260_v50, %v3642_v7  ;;  %v1263_v53 = vadd.f32 %v2585_v46, %v1262_v51  ;;  %v2921_v54 = vpop.f32.mrb[27].mxu1  ;;  %v3340_v7 = vld [vmem:[%s4162_s1 + $0x138] sm:$0xff]  }
 0x685   : > { %2937 = vmatpush3.bf16.msra.mxu0 %v3340_v7 }
 0x686   : > { %v1293_v59 = vmul.f32 %v2595_v49, %v3798_v52  ;;  %v3808_v61 = vadd.f32 %v1263_v53, %v3652_v13  ;;  %2938 = vmatprep.subr.bf16.mxu0 %v3373_v1 }
 0x688   : > { %v1294_v63 = vmul.f32 %v2595_v49, %v3808_v61  ;;  %v1304_v2 = vadd.f32 %v2596_v55, %v1293_v59 }
 0x689   : > { %v1267_v4 = vpop.f32.mrb[28].mxu1  ;;  %2939 = vmatpush3.bf16.msra.mxu0 %v3341_v14 }
 0x68a   : > { %v1268_v5 = vadd.f32 %v2585_v46, %v1267_v4  ;;  %v2924_v6 = vpop.f32.mrb[29].mxu1  ;;  %v1305_v8 = vadd.f32 %v2596_v55, %v1294_v63  ;;  %v1310_v9 = vmax.f32 %v1304_v2, 0.0  ;;  %2940 = vmatprep.subr.bf16.mxu0 %v3373_v1 }
 0x68b   : > { %v1270_v10 = vpop.f32.mrb[30].mxu1 }
 0x68c   : > { %v3816_v13 = vadd.f32 %v1268_v5, %v3660_v25  ;;  %v1271_v11 = vadd.f32 %v2585_v46, %v1270_v10  ;;  %v2925_v12 = vpop.f32.mrb[31].mxu1  ;;  %v1311_v19 = vmax.f32 %v1305_v8, 0.0  ;;  %1316 = vst.msk [vmem:[#allocation2 + $0x2] sm:$0xff] %vm172_vm3, %v1310_v9 }
 0x68d   : > { %2941 = vmatpush3.bf16.msra.mxu0 %v3342_v21 }
 0x68e   : > { %v1295_v15 = vmul.f32 %v2595_v49, %v3816_v13  ;;  %v3825_v16 = vadd.f32 %v1271_v11, %v3669_v29  ;;  %v3191_v17 = vpack.i.bf16 %v1311_v19, %v1310_v9  ;;  %1317 = vst.msk [vmem:[#allocation2 + $0xa] sm:$0xff] %vm172_vm3, %v1311_v19  ;;  %2978 = vmatprep.subr.bf16.mxu0 %v3373_v1 }
 0x690   : > { %v1296_v25 = vmul.f32 %v2595_v49, %v3825_v16  ;;  %3192 = vrot.lane.b32.xlu0 %v3191_v17, %s3375_s15  ;;  %v1306_v18 = vadd.f32 %v2596_v55, %v1295_v15 }
 0x691   : > { %v1275_v20 = vpop.f32.mrb[32].mxu1 }
 0x692   : > { %v1276_v22 = vadd.f32 %v2585_v46, %v1275_v20  ;;  %v2928_v23 = vpop.f32.mrb[33].mxu1  ;;  %v1307_v29 = vadd.f32 %v2596_v55, %v1296_v25  ;;  %v1312_v24 = vmax.f32 %v1306_v18, 0.0 }
 0x693   : > { %v1278_v26 = vpop.f32.mrb[34].mxu1 }
 0x694   : > { %v3835_v27 = vadd.f32 %v1276_v22, %v3679_v39  ;;  %v1279_v28 = vadd.f32 %v2585_v46, %v1278_v26  ;;  %v2929_v30 = vpop.f32.mrb[35].mxu1  ;;  %v1313_v34 = vmax.f32 %v1307_v29, 0.0  ;;  %1318 = vst.msk [vmem:[#allocation2 + $0x12] sm:$0xff] %vm172_vm3, %v1312_v24 }
 0x695   : > { %v1328_v37 = vld [vmem:[#allocation2 + $0x4] sm:$0xff] }
 0x696   : > { %v1297_v31 = vmul.f32 %v2595_v49, %v3835_v27  ;;  %v3841_v32 = vadd.f32 %v1279_v28, %v3685_v45  ;;  %v3201_v33 = vpack.i.bf16 %v1313_v34, %v1312_v24  ;;  %1319 = vst.msk [vmem:[#allocation2 + $0x1a] sm:$0xff] %vm172_vm3, %v1313_v34  ;;  %v1323_v57 = vld [vmem:[#allocation2 + $0x8] sm:$0xff] }
 0x698   : > { %v1298_v35 = vmul.f32 %v2595_v49, %v3841_v32  ;;  %3202 = vrot.lane.b32.xlu0 %v3201_v33, %s3375_s15  ;;  %v1308_v39 = vadd.f32 %v2596_v55, %v1297_v31 }
 0x69a   : > { %v1309_v36 = vadd.f32 %v2596_v55, %v1298_v35  ;;  %v1314_v40 = vmax.f32 %v1308_v39, 0.0  ;;  %v1322_v55 = vld [vmem:[#allocation2] sm:$0xff] }
 0x69b   : > { %v1329_v38 = vld [vmem:[#allocation2 + $0xc] sm:$0xff] }
 0x69c   : > { %v3196_v41 = vpack.i.bf16 %v1329_v38, %v1328_v37  ;;  %v1315_v42 = vmax.f32 %v1309_v36, 0.0  ;;  %1320 = vst.msk [vmem:[#allocation2 + $0x22] sm:$0xff] %vm172_vm3, %v1314_v40  ;;  %v1324_v12 = vld [vmem:[#allocation2 + $0x10] sm:$0xff]  ;;  %v3344_v37 = vld [vmem:[%s4162_s1 + $0x158] sm:$0xff]  }
 0x69d   : > { %v1330_v43 = vld [vmem:[#allocation2 + $0x14] sm:$0xff] }
 0x69e   : > { %3197 = vrot.lane.b32.xlu1 %v3196_v41, %s3376_s19  ;;  %v3211_v45 = vpack.i.bf16 %v1315_v42, %v1314_v40  ;;  %1321 = vst.msk [vmem:[#allocation2 + $0x2a] sm:$0xff] %vm172_vm3, %v1315_v42  ;;  %v1325_v19 = vld [vmem:[#allocation2 + $0x18] sm:$0xff]  ;;  %v3343_v40 = vld [vmem:[%s4162_s1 + $0x150] sm:$0xff]   ;;  %v2619_v42 = vld [vmem:[%s4163_s2 + $0xc] ss:$0 sm:$0xff] }
 0x69f   : > { %2955 = vmatpush3.bf16.msra.mxu1 %v3343_v40  ;;  %v2609_v38 = vld [vmem:[%s4163_s2 + $0x16] ss:$0 sm:$0xff] }
 0x6a0   : > { %3212 = vrot.lane.b32.xlu0 %v3211_v45, %s3375_s15  ;;  %2956 = vmatprep.subr.bf16.mxu1 %v3373_v1 }
 0x6a3   : > { %v1331_v44 = vld [vmem:[#allocation2 + $0x1c] sm:$0xff]  ;;  %2957 = vmatpush3.bf16.msra.mxu1 %v3344_v37 }
 0x6a4   : > { %v3206_v46 = vpack.i.bf16 %v1331_v44, %v1330_v43  ;;  %v1326_v30 = vld [vmem:[#allocation2 + $0x20] sm:$0xff]  ;;  %2958 = vmatprep.subr.bf16.mxu1 %v3373_v1  ;;  %v2620_v44 = vld [vmem:[%s4163_s2 + $0xd] ss:$0 sm:$0xff] }
 0x6a5   : > { %v1332_v47 = vld [vmem:[#allocation2 + $0x24] sm:$0xff]  ;;  %v1333_v50 = vld [vmem:[#allocation2 + $0x2c] sm:$0xff] }
 0x6a6   : > { %3207 = vrot.lane.b32.xlu1 %v3206_v46, %s3376_s19  ;;  %v3216_v48 = vpack.i.bf16 %v1333_v50, %v1332_v47  ;;  %v1327_v34 = vld [vmem:[#allocation2 + $0x28] sm:$0xff]  ;;  %v3345_v47 = vld [vmem:[%s4162_s1 + $0x160] sm:$0xff]  }
 0x6a7   : > { %2959 = vmatpush3.bf16.msra.mxu1 %v3345_v47 }
 0x6a8   : > { %2960 = vmatprep.subr.bf16.mxu1 %v3373_v1 }
 0x6aa   : > { %3217 = vrot.lane.b32.xlu1 %v3216_v48, %s3376_s19 }
 0x702   : > { %v3193_v49 = vpop.permute.xlu0 %3192 }
 0x703   : > { %v3195_v51 = vunpack.i.h.bf16 %v3193_v49  ;;  %v3194_v53 = vunpack.i.l.bf16 %v3193_v49 }
 0x705   : > { %v1383_v63 = vsel %vm172_vm3, %v1323_v57, %v3195_v51  ;;  %v1382_v2 = vsel %vm172_vm3, %v1322_v55, %v3194_v53  ;;  %v3346_v51 = vld [vmem:[%s4162_s1 + $0x168] sm:$0xff]  }
 0x706   : > { %2961 = vmatpush3.bf16.msra.mxu1 %v3346_v51 }
 0x707   : > { %2962 = vmatprep.subr.bf16.mxu1 %v3373_v1 }
 0x70a   : > { %v3203_v4 = vpop.permute.xlu0 %3202 }
 0x70b   : > { %v3205_v9 = vunpack.i.h.bf16 %v3203_v4  ;;  %v3204_v10 = vunpack.i.l.bf16 %v3203_v4 }
 0x70d   : > { %v1385_v25 = vsel %vm172_vm3, %v1325_v19, %v3205_v9  ;;  %v1384_v18 = vsel %vm172_vm3, %v1324_v12, %v3204_v10  ;;  %v3348_v19 = vld [vmem:[%s4162_s1 + $0x178] sm:$0xff]  }
 0x710   : > { %v3198_v54 = vpop.permute.xlu1 %3197 }
 0x711   : > { %v3200_v59 = vunpack.i.h.bf16 %v3198_v54  ;;  %v3199_v7 = vunpack.i.l.bf16 %v3198_v54 }
 0x712   : > { %v3213_v14 = vpop.permute.xlu0 %3212 }
 0x713   : > { %v1389_v5 = vsel %vm458_vm5, %v1383_v63, %v3200_v59  ;;  %v1388_v6 = vsel %vm458_vm5, %v1382_v2, %v3199_v7  ;;  %v3215_v22 = vunpack.i.h.bf16 %v3213_v14  ;;  %v3214_v23 = vunpack.i.l.bf16 %v3213_v14 }
 0x714   : > { %v1407_v8 = vpack.c.bf16 %v1389_v5, %v1388_v6  ;;  %v3347_v5 = vld [vmem:[%s4162_s1 + $0x170] sm:$0xff]  }
 0x715   : > { %v1386_v31 = vsel %vm172_vm3, %v1326_v30, %v3214_v23  ;;  %v1387_v33 = vsel %vm172_vm3, %v1327_v34, %v3215_v22  ;;  %2963 = vmatpush3.bf16.msra.mxu1 %v3347_v5 }
 0x716   : > { %2943 = vmatmul.mubr.msk.bf16.vlgmr.msra.gmra.mrb[36].mxu0 %vm522_vm6, %v1407_v8  ;;  %2964 = vmatprep.subr.bf16.mxu1 %v3373_v1 }
 0x717   : > { %2946 = vmatprep.mubr.msk.bf16.mxu0 %vm3374_vm1, %v3373_v1 }
 0x718   : > { %v3208_v11 = vpop.permute.xlu1 %3207 }
 0x719   : > { %v3210_v15 = vunpack.i.h.bf16 %v3208_v11  ;;  %v3209_v17 = vunpack.i.l.bf16 %v3208_v11  ;;  %2965 = vmatpush3.bf16.msra.mxu1 %v3348_v19 }
 0x71a   : > { %3002 = vmatprep.subr.bf16.mxu1 %v3373_v1 }
 0x71b   : > { %v1391_v20 = vsel %vm458_vm5, %v1385_v25, %v3210_v15  ;;  %v1390_v21 = vsel %vm458_vm5, %v1384_v18, %v3209_v17 }
 0x71c   : > { %v1408_v29 = vpack.c.bf16 %v1391_v20, %v1390_v21  ;;  %v3218_v24 = vpop.permute.xlu1 %3217 }
 0x71d   : > { %v3220_v26 = vunpack.i.h.bf16 %v3218_v24  ;;  %v3219_v28 = vunpack.i.l.bf16 %v3218_v24 }
 0x71e   : > { %2947 = vmatmul.mubr.msk.bf16.gmra.mrb[40].mxu0 %vm522_vm6, %v1408_v29 }
 0x71f   : > { %2950 = vmatprep.mubr.msk.bf16.mxu0 %vm3374_vm1, %v3373_v1  ;;  %v1392_v35 = vsel %vm458_vm5, %v1386_v31, %v3219_v28  ;;  %v1393_v39 = vsel %vm458_vm5, %v1387_v33, %v3220_v26 }
 0x720   : > { %v1409_v36 = vpack.c.bf16 %v1393_v39, %v1392_v35 }
 0x726   : > { %2951 = vmatmul.mubr.msk.bf16.gmra.mrb[44].mxu0 %vm522_vm6, %v1409_v36 }
 0x727   : > { %2990 = vmatprep.mubr.msk.bf16.mxu0 %vm3374_vm1, %v3373_v1 }
 0x7e9   : > { %v1494_v41 = vpop.f32.mrb[36].mxu0 }
 0x7ea   : > { %v1495_v45 = vadd.f32 %v2609_v38, %v1494_v41  ;;  %v2944_v43 = vpop.f32.mrb[37].mxu0 }
 0x7eb   : > { %v1497_v46 = vpop.f32.mrb[38].mxu0 }
 0x7ec   : > { %v1522_v50 = vmul.f32 %v2619_v42, %v1495_v45  ;;  %v1498_v48 = vadd.f32 %v2609_v38, %v1497_v46  ;;  %v2945_v49 = vpop.f32.mrb[39].mxu0 }
 0x7ee   : > { %v1533_v53 = vadd.f32 %v2620_v44, %v1522_v50  ;;  %v1523_v54 = vmul.f32 %v2619_v42, %v1498_v48 }
 0x7f0   : > { %v1539_v55 = vmax.f32 %v1533_v53, 0.0  ;;  %v1534_v57 = vadd.f32 %v2620_v44, %v1523_v54 }
 0x7f1   : > { %v1502_v59 = vpop.f32.mrb[40].mxu0 }
 0x7f2   : > { %1545 = vst.msk [vmem:[#allocation2 + $0x2] sm:$0xff] %vm172_vm3, %v1539_v55  ;;  %v1540_v7 = vmax.f32 %v1534_v57, 0.0  ;;  %v1503_v63 = vadd.f32 %v2609_v38, %v1502_v59  ;;  %v2948_v2 = vpop.f32.mrb[41].mxu0 }
 0x7f3   : > { %v1505_v4 = vpop.f32.mrb[42].mxu0 }
 0x7f4   : > { %1546 = vst.msk [vmem:[#allocation2 + $0xa] sm:$0xff] %vm172_vm3, %v1540_v7  ;;  %v1524_v6 = vmul.f32 %v2619_v42, %v1503_v63  ;;  %v1506_v8 = vadd.f32 %v2609_v38, %v1505_v4  ;;  %v2949_v9 = vpop.f32.mrb[43].mxu0  ;;  %v3221_v10 = vpack.i.bf16 %v1540_v7, %v1539_v55 }
 0x7f6   : > { %v1535_v11 = vadd.f32 %v2620_v44, %v1524_v6  ;;  %v1525_v12 = vmul.f32 %v2619_v42, %v1506_v8  ;;  %3222 = vrot.lane.b32.xlu0 %v3221_v10, %s3375_s15 }
 0x7f8   : > { %v1541_v14 = vmax.f32 %v1535_v11, 0.0  ;;  %v1536_v15 = vadd.f32 %v2620_v44, %v1525_v12 }
 0x7f9   : > { %v1510_v17 = vpop.f32.mrb[44].mxu0  ;;  %v1551_v50 = vld [vmem:[#allocation2] sm:$0xff] }
 0x7fa   : > { %1547 = vst.msk [vmem:[#allocation2 + $0x12] sm:$0xff] %vm172_vm3, %v1541_v14  ;;  %v1542_v25 = vmax.f32 %v1536_v15, 0.0  ;;  %v1511_v18 = vadd.f32 %v2609_v38, %v1510_v17  ;;  %v2952_v20 = vpop.f32.mrb[45].mxu0 }
 0x7fb   : > { %v1513_v21 = vpop.f32.mrb[46].mxu0  ;;  %v1557_v31 = vld [vmem:[#allocation2 + $0x4] sm:$0xff] }
 0x7fc   : > { %1548 = vst.msk [vmem:[#allocation2 + $0x1a] sm:$0xff] %vm172_vm3, %v1542_v25  ;;  %v1526_v22 = vmul.f32 %v2619_v42, %v1511_v18  ;;  %v1514_v23 = vadd.f32 %v2609_v38, %v1513_v21  ;;  %v2953_v29 = vpop.f32.mrb[47].mxu0  ;;  %v3231_v24 = vpack.i.bf16 %v1542_v25, %v1541_v14  ;;  %v1552_v48 = vld [vmem:[#allocation2 + $0x8] sm:$0xff] }
 0x7fe   : > { %v1537_v26 = vadd.f32 %v2620_v44, %v1526_v22  ;;  %v1527_v28 = vmul.f32 %v2619_v42, %v1514_v23  ;;  %3232 = vrot.lane.b32.xlu0 %v3231_v24, %s3375_s15 }
 0x800   : > { %v1543_v30 = vmax.f32 %v1537_v26, 0.0  ;;  %v1538_v34 = vadd.f32 %v2620_v44, %v1527_v28 }
 0x801   : > { %v1558_v33 = vld [vmem:[#allocation2 + $0xc] sm:$0xff] }
 0x802   : > { %1549 = vst.msk [vmem:[#allocation2 + $0x22] sm:$0xff] %vm172_vm3, %v1543_v30  ;;  %v1544_v35 = vmax.f32 %v1538_v34, 0.0  ;;  %v3226_v39 = vpack.i.bf16 %v1558_v33, %v1557_v31  ;;  %v1553_v5 = vld [vmem:[#allocation2 + $0x10] sm:$0xff]  ;;  %v3349_v34 = vld [vmem:[%s4162_s1 + $0x180] sm:$0xff]   ;;  %v3350_v31 = vld [vmem:[%s4162_s1 + $0x188] sm:$0xff]  }
 0x803   : > { %v1559_v40 = vld [vmem:[#allocation2 + $0x14] sm:$0xff]  ;;  %2979 = vmatpush3.bf16.msra.mxu0 %v3349_v34 }
 0x804   : > { %1550 = vst.msk [vmem:[#allocation2 + $0x2a] sm:$0xff] %vm172_vm3, %v1544_v35  ;;  %3227 = vrot.lane.b32.xlu1 %v3226_v39, %s3376_s19  ;;  %v3241_v36 = vpack.i.bf16 %v1544_v35, %v1543_v30  ;;  %v1554_v6 = vld [vmem:[#allocation2 + $0x18] sm:$0xff]  ;;  %2980 = vmatprep.subr.bf16.mxu0 %v3373_v1  ;;  %v2633_v33 = vld [vmem:[%s4163_s2 + $0x17] ss:$0 sm:$0xff] }
 0x806   : > { %3242 = vrot.lane.b32.xlu0 %v3241_v36, %s3375_s15 }
 0x807   : > { %2981 = vmatpush3.bf16.msra.mxu0 %v3350_v31 }
 0x808   : > { %2982 = vmatprep.subr.bf16.mxu0 %v3373_v1 }
 0x809   : > { %v1560_v37 = vld [vmem:[#allocation2 + $0x1c] sm:$0xff] }
 0x80a   : > { %v3236_v38 = vpack.i.bf16 %v1560_v37, %v1559_v40  ;;  %v1555_v22 = vld [vmem:[#allocation2 + $0x20] sm:$0xff]  ;;  %v2643_v40 = vld [vmem:[%s4163_s2 + $0xe] ss:$0 sm:$0xff] }
 0x80b   : > { %v1561_v41 = vld [vmem:[#allocation2 + $0x24] sm:$0xff]  ;;  %v1562_v42 = vld [vmem:[#allocation2 + $0x2c] sm:$0xff] }
 0x80c   : > { %3237 = vrot.lane.b32.xlu1 %v3236_v38, %s3376_s19  ;;  %v3246_v45 = vpack.i.bf16 %v1562_v42, %v1561_v41  ;;  %v1556_v23 = vld [vmem:[#allocation2 + $0x28] sm:$0xff] }
 0x810   : > { %3247 = vrot.lane.b32.xlu1 %v3246_v45, %s3376_s19  ;;  %v2644_v45 = vld [vmem:[%s4163_s2 + $0xf] ss:$0 sm:$0xff] }
 0x868   : > { %v3223_v43 = vpop.permute.xlu0 %3222 }
 0x869   : > { %v3225_v44 = vunpack.i.h.bf16 %v3223_v43  ;;  %v3224_v46 = vunpack.i.l.bf16 %v3223_v43  ;;  %v3351_v43 = vld [vmem:[%s4162_s1 + $0x190] sm:$0xff]  }
 0x86a   : > { %2983 = vmatpush3.bf16.msra.mxu0 %v3351_v43 }
 0x86b   : > { %v1611_v53 = vsel %vm172_vm3, %v1551_v50, %v3224_v46  ;;  %v1612_v54 = vsel %vm172_vm3, %v1552_v48, %v3225_v44  ;;  %2984 = vmatprep.subr.bf16.mxu0 %v3373_v1 }
 0x870   : > { %v3233_v55 = vpop.permute.xlu0 %3232 }
 0x871   : > { %v3235_v63 = vunpack.i.h.bf16 %v3233_v55  ;;  %v3234_v2 = vunpack.i.l.bf16 %v3233_v55 }
 0x873   : > { %v1613_v11 = vsel %vm172_vm3, %v1553_v5, %v3234_v2  ;;  %v1614_v12 = vsel %vm172_vm3, %v1554_v6, %v3235_v63  ;;  %v3353_v63 = vld [vmem:[%s4162_s1 + $0x1a0] sm:$0xff]  }
 0x876   : > { %v3228_v47 = vpop.permute.xlu1 %3227 }
 0x877   : > { %v3230_v49 = vunpack.i.h.bf16 %v3228_v47  ;;  %v3229_v51 = vunpack.i.l.bf16 %v3228_v47 }
 0x878   : > { %v3243_v8 = vpop.permute.xlu0 %3242 }
 0x879   : > { %v1618_v57 = vsel %vm458_vm5, %v1612_v54, %v3230_v49  ;;  %v1617_v59 = vsel %vm458_vm5, %v1611_v53, %v3229_v51  ;;  %v3245_v15 = vunpack.i.h.bf16 %v3243_v8  ;;  %v3244_v17 = vunpack.i.l.bf16 %v3243_v8 }
 0x87a   : > { %v1636_v7 = vpack.c.bf16 %v1618_v57, %v1617_v59 }
 0x87b   : > { %v1615_v29 = vsel %vm172_vm3, %v1555_v22, %v3244_v17  ;;  %v1616_v24 = vsel %vm172_vm3, %v1556_v23, %v3245_v15 }
 0x87c   : > { %2967 = vmatmul.mubr.msk.bf16.vlgmr.msra.gmra.mrb[36].mxu1 %vm522_vm6, %v1636_v7 }
 0x87d   : > { %2970 = vmatprep.mubr.msk.bf16.mxu1 %vm3374_vm1, %v3373_v1 }
 0x87e   : > { %v3238_v4 = vpop.permute.xlu1 %3237 }
 0x87f   : > { %v3240_v9 = vunpack.i.h.bf16 %v3238_v4  ;;  %v3239_v10 = vunpack.i.l.bf16 %v3238_v4 }
 0x881   : > { %v1620_v19 = vsel %vm458_vm5, %v1614_v12, %v3240_v9  ;;  %v1619_v14 = vsel %vm458_vm5, %v1613_v11, %v3239_v10  ;;  %v3354_v9 = vld [vmem:[%s4162_s1 + $0x1a8] sm:$0xff]  }
 0x882   : > { %v1637_v25 = vpack.c.bf16 %v1620_v19, %v1619_v14  ;;  %v3248_v18 = vpop.permute.xlu1 %3247 }
 0x883   : > { %v3250_v20 = vunpack.i.h.bf16 %v3248_v18  ;;  %v3249_v21 = vunpack.i.l.bf16 %v3248_v18 }
 0x884   : > { %2971 = vmatmul.mubr.msk.bf16.gmra.mrb[40].mxu1 %vm522_vm6, %v1637_v25 }
 0x885   : > { %2974 = vmatprep.mubr.msk.bf16.mxu1 %vm3374_vm1, %v3373_v1  ;;  %v1621_v26 = vsel %vm458_vm5, %v1615_v29, %v3249_v21  ;;  %v1622_v28 = vsel %vm458_vm5, %v1616_v24, %v3250_v20 }
 0x886   : > { %v1638_v30 = vpack.c.bf16 %v1622_v28, %v1621_v26 }
 0x88c   : > { %2975 = vmatmul.mubr.msk.bf16.gmra.mrb[44].mxu1 %vm522_vm6, %v1638_v30 }
 0x88d   : > { %3014 = vmatprep.mubr.msk.bf16.mxu1 %vm3374_vm1, %v3373_v1 }
 0x94f   : > { %v1723_v35 = vpop.f32.mrb[36].mxu1 }
 0x950   : > { %v1724_v39 = vadd.f32 %v2633_v33, %v1723_v35  ;;  %v2968_v36 = vpop.f32.mrb[37].mxu1 }
 0x951   : > { %v1726_v37 = vpop.f32.mrb[38].mxu1 }
 0x952   : > { %v3954_v38 = vadd.f32 %v1724_v39, %v3798_v52  ;;  %v1727_v41 = vadd.f32 %v2633_v33, %v1726_v37  ;;  %v2969_v42 = vpop.f32.mrb[39].mxu1  ;;  %v3352_v52 = vld [vmem:[%s4162_s1 + $0x198] sm:$0xff]  }
 0x953   : > { %2985 = vmatpush3.bf16.msra.mxu0 %v3352_v52 }
 0x954   : > { %v1757_v44 = vmul.f32 %v2643_v40, %v3954_v38  ;;  %v3964_v46 = vadd.f32 %v1727_v41, %v3808_v61  ;;  %2986 = vmatprep.subr.bf16.mxu0 %v3373_v1 }
 0x956   : > { %v1758_v47 = vmul.f32 %v2643_v40, %v3964_v46  ;;  %v1768_v50 = vadd.f32 %v2644_v45, %v1757_v44 }
 0x957   : > { %v1731_v48 = vpop.f32.mrb[40].mxu1  ;;  %2987 = vmatpush3.bf16.msra.mxu0 %v3353_v63 }
 0x958   : > { %v1732_v49 = vadd.f32 %v2633_v33, %v1731_v48  ;;  %v2972_v51 = vpop.f32.mrb[41].mxu1  ;;  %v1769_v53 = vadd.f32 %v2644_v45, %v1758_v47  ;;  %v1774_v54 = vmax.f32 %v1768_v50, 0.0  ;;  %2988 = vmatprep.subr.bf16.mxu0 %v3373_v1 }
 0x959   : > { %v1734_v55 = vpop.f32.mrb[42].mxu1 }
 0x95a   : > { %v3972_v61 = vadd.f32 %v1732_v49, %v3816_v13  ;;  %v1735_v57 = vadd.f32 %v2633_v33, %v1734_v55  ;;  %v2973_v59 = vpop.f32.mrb[43].mxu1  ;;  %v1775_v7 = vmax.f32 %v1769_v53, 0.0  ;;  %1780 = vst.msk [vmem:[#allocation2 + $0x2] sm:$0xff] %vm172_vm3, %v1774_v54 }
 0x95b   : > { %2989 = vmatpush3.bf16.msra.mxu0 %v3354_v9 }
 0x95c   : > { %v1759_v2 = vmul.f32 %v2643_v40, %v3972_v61  ;;  %v3981_v4 = vadd.f32 %v1735_v57, %v3825_v16  ;;  %v3251_v5 = vpack.i.bf16 %v1775_v7, %v1774_v54  ;;  %1781 = vst.msk [vmem:[#allocation2 + $0xa] sm:$0xff] %vm172_vm3, %v1775_v7  ;;  %3026 = vmatprep.subr.bf16.mxu0 %v3373_v1 }
 0x95e   : > { %v1760_v13 = vmul.f32 %v2643_v40, %v3981_v4  ;;  %3252 = vrot.lane.b32.xlu0 %v3251_v5, %s3375_s15  ;;  %v1770_v6 = vadd.f32 %v2644_v45, %v1759_v2 }
 0x95f   : > { %v1739_v8 = vpop.f32.mrb[44].mxu1 }
 0x960   : > { %v1740_v10 = vadd.f32 %v2633_v33, %v1739_v8  ;;  %v2976_v11 = vpop.f32.mrb[45].mxu1  ;;  %v1771_v16 = vadd.f32 %v2644_v45, %v1760_v13  ;;  %v1776_v12 = vmax.f32 %v1770_v6, 0.0 }
 0x961   : > { %v1742_v19 = vpop.f32.mrb[46].mxu1 }
 0x962   : > { %v3991_v14 = vadd.f32 %v1740_v10, %v3835_v27  ;;  %v1743_v15 = vadd.f32 %v2633_v33, %v1742_v19  ;;  %v2977_v17 = vpop.f32.mrb[47].mxu1  ;;  %v1777_v25 = vmax.f32 %v1771_v16, 0.0  ;;  %1782 = vst.msk [vmem:[#allocation2 + $0x12] sm:$0xff] %vm172_vm3, %v1776_v12 }
 0x963   : > { %v1792_v24 = vld [vmem:[#allocation2 + $0x4] sm:$0xff] }
 0x964   : > { %v1761_v18 = vmul.f32 %v2643_v40, %v3991_v14  ;;  %v3997_v20 = vadd.f32 %v1743_v15, %v3841_v32  ;;  %v3261_v21 = vpack.i.bf16 %v1777_v25, %v1776_v12  ;;  %1783 = vst.msk [vmem:[#allocation2 + $0x1a] sm:$0xff] %vm172_vm3, %v1777_v25  ;;  %v1787_v43 = vld [vmem:[#allocation2 + $0x8] sm:$0xff] }
 0x966   : > { %v1762_v22 = vmul.f32 %v2643_v40, %v3997_v20  ;;  %3262 = vrot.lane.b32.xlu0 %v3261_v21, %s3375_s15  ;;  %v1772_v27 = vadd.f32 %v2644_v45, %v1761_v18 }
 0x968   : > { %v1773_v23 = vadd.f32 %v2644_v45, %v1762_v22  ;;  %v1778_v29 = vmax.f32 %v1772_v27, 0.0  ;;  %v1786_v45 = vld [vmem:[#allocation2] sm:$0xff] }
 0x969   : > { %v1793_v26 = vld [vmem:[#allocation2 + $0xc] sm:$0xff] }
 0x96a   : > { %v3256_v28 = vpack.i.bf16 %v1793_v26, %v1792_v24  ;;  %v1779_v30 = vmax.f32 %v1773_v23, 0.0  ;;  %1784 = vst.msk [vmem:[#allocation2 + $0x22] sm:$0xff] %vm172_vm3, %v1778_v29  ;;  %v1788_v59 = vld [vmem:[#allocation2 + $0x10] sm:$0xff]  ;;  %v3356_v24 = vld [vmem:[%s4162_s1 + $0x1b8] sm:$0xff]  }
 0x96b   : > { %v1794_v34 = vld [vmem:[#allocation2 + $0x14] sm:$0xff] }
 0x96c   : > { %3257 = vrot.lane.b32.xlu1 %v3256_v28, %s3376_s19  ;;  %v3271_v32 = vpack.i.bf16 %v1779_v30, %v1778_v29  ;;  %1785 = vst.msk [vmem:[#allocation2 + $0x2a] sm:$0xff] %vm172_vm3, %v1779_v30  ;;  %v1789_v7 = vld [vmem:[#allocation2 + $0x18] sm:$0xff]  ;;  %v3355_v29 = vld [vmem:[%s4162_s1 + $0x1b0] sm:$0xff]  }
 0x96d   : > { %3003 = vmatpush3.bf16.msra.mxu1 %v3355_v29  ;;  %v2657_v26 = vld [vmem:[%s4163_s2 + $0x18] ss:$0 sm:$0xff]  ;;  %v2667_v30 = vld [vmem:[%s4163_s2 + $0x10] ss:$0 sm:$0xff] }
 0x96e   : > { %3272 = vrot.lane.b32.xlu0 %v3271_v32, %s3375_s15  ;;  %3004 = vmatprep.subr.bf16.mxu1 %v3373_v1 }
 0x971   : > { %v1795_v31 = vld [vmem:[#allocation2 + $0x1c] sm:$0xff]  ;;  %3005 = vmatpush3.bf16.msra.mxu1 %v3356_v24 }
 0x972   : > { %v3266_v33 = vpack.i.bf16 %v1795_v31, %v1794_v34  ;;  %v1790_v17 = vld [vmem:[#allocation2 + $0x20] sm:$0xff]  ;;  %3006 = vmatprep.subr.bf16.mxu1 %v3373_v1  ;;  %v2668_v31 = vld [vmem:[%s4163_s2 + $0x11] ss:$0 sm:$0xff] }
 0x973   : > { %v1796_v35 = vld [vmem:[#allocation2 + $0x24] sm:$0xff]  ;;  %v1797_v39 = vld [vmem:[#allocation2 + $0x2c] sm:$0xff] }
 0x974   : > { %3267 = vrot.lane.b32.xlu1 %v3266_v33, %s3376_s19  ;;  %v3276_v36 = vpack.i.bf16 %v1797_v39, %v1796_v35  ;;  %v1791_v25 = vld [vmem:[#allocation2 + $0x28] sm:$0xff]  ;;  %v3357_v35 = vld [vmem:[%s4162_s1 + $0x1c0] sm:$0xff]  }
 0x975   : > { %3007 = vmatpush3.bf16.msra.mxu1 %v3357_v35 }
 0x976   : > { %3008 = vmatprep.subr.bf16.mxu1 %v3373_v1 }
 0x978   : > { %3277 = vrot.lane.b32.xlu1 %v3276_v36, %s3376_s19 }
 0x9d0   : > { %v3253_v40 = vpop.permute.xlu0 %3252 }
 0x9d1   : > { %v3255_v37 = vunpack.i.h.bf16 %v3253_v40  ;;  %v3254_v41 = vunpack.i.l.bf16 %v3253_v40 }
 0x9d3   : > { %v1847_v47 = vsel %vm172_vm3, %v1787_v43, %v3255_v37  ;;  %v1846_v50 = vsel %vm172_vm3, %v1786_v45, %v3254_v41  ;;  %v3358_v37 = vld [vmem:[%s4162_s1 + $0x1c8] sm:$0xff]  }
 0x9d4   : > { %3009 = vmatpush3.bf16.msra.mxu1 %v3358_v37 }
 0x9d5   : > { %3010 = vmatprep.subr.bf16.mxu1 %v3373_v1 }
 0x9d8   : > { %v3263_v48 = vpop.permute.xlu0 %3262 }
 0x9d9   : > { %v3265_v54 = vunpack.i.h.bf16 %v3263_v48  ;;  %v3264_v55 = vunpack.i.l.bf16 %v3263_v48 }
 0x9db   : > { %v1849_v13 = vsel %vm172_vm3, %v1789_v7, %v3265_v54  ;;  %v1848_v6 = vsel %vm172_vm3, %v1788_v59, %v3264_v55  ;;  %v3360_v7 = vld [vmem:[%s4162_s1 + $0x1d8] sm:$0xff]  }
 0x9de   : > { %v3258_v42 = vpop.permute.xlu1 %3257 }
 0x9df   : > { %v3260_v44 = vunpack.i.h.bf16 %v3258_v42  ;;  %v3259_v52 = vunpack.i.l.bf16 %v3258_v42 }
 0x9e0   : > { %v3273_v63 = vpop.permute.xlu0 %3272 }
 0x9e1   : > { %v1853_v49 = vsel %vm458_vm5, %v1847_v47, %v3260_v44  ;;  %v1852_v51 = vsel %vm458_vm5, %v1846_v50, %v3259_v52  ;;  %v3275_v10 = vunpack.i.h.bf16 %v3273_v63  ;;  %v3274_v11 = vunpack.i.l.bf16 %v3273_v63 }
 0x9e2   : > { %v1871_v53 = vpack.c.bf16 %v1853_v49, %v1852_v51  ;;  %v3359_v49 = vld [vmem:[%s4162_s1 + $0x1d0] sm:$0xff]  }
 0x9e3   : > { %v1850_v18 = vsel %vm172_vm3, %v1790_v17, %v3274_v11  ;;  %v1851_v21 = vsel %vm172_vm3, %v1791_v25, %v3275_v10  ;;  %3011 = vmatpush3.bf16.msra.mxu1 %v3359_v49 }
 0x9e4   : > { %2991 = vmatmul.mubr.msk.bf16.vlgmr.msra.gmra.mrb[48].mxu0 %vm522_vm6, %v1871_v53  ;;  %3012 = vmatprep.subr.bf16.mxu1 %v3373_v1 }
 0x9e5   : > { %2994 = vmatprep.mubr.msk.bf16.mxu0 %vm3374_vm1, %v3373_v1 }
 0x9e6   : > { %v3268_v57 = vpop.permute.xlu1 %3267 }
 0x9e7   : > { %v3270_v2 = vunpack.i.h.bf16 %v3268_v57  ;;  %v3269_v5 = vunpack.i.l.bf16 %v3268_v57  ;;  %3013 = vmatpush3.bf16.msra.mxu1 %v3360_v7 }
 0x9e8   : > { %3042 = vmatprep.subr.bf16.mxu1 %v3373_v1 }
 0x9e9   : > { %v1855_v8 = vsel %vm458_vm5, %v1849_v13, %v3270_v2  ;;  %v1854_v9 = vsel %vm458_vm5, %v1848_v6, %v3269_v5 }
 0x9ea   : > { %v1872_v16 = vpack.c.bf16 %v1855_v8, %v1854_v9  ;;  %v3278_v12 = vpop.permute.xlu1 %3277 }
 0x9eb   : > { %v3280_v19 = vunpack.i.h.bf16 %v3278_v12  ;;  %v3279_v15 = vunpack.i.l.bf16 %v3278_v12 }
 0x9ec   : > { %2995 = vmatmul.mubr.msk.bf16.gmra.mrb[52].mxu0 %vm522_vm6, %v1872_v16 }
 0x9ed   : > { %2998 = vmatprep.mubr.msk.bf16.mxu0 %vm3374_vm1, %v3373_v1  ;;  %v1856_v22 = vsel %vm458_vm5, %v1850_v18, %v3279_v15  ;;  %v1857_v27 = vsel %vm458_vm5, %v1851_v21, %v3280_v19 }
 0x9ee   : > { %v1873_v23 = vpack.c.bf16 %v1857_v27, %v1856_v22 }
 0x9f4   : > { %2999 = vmatmul.mubr.msk.bf16.gmra.mrb[56].mxu0 %vm522_vm6, %v1873_v23 }
 0x9f5   : > { %3030 = vmatprep.mubr.msk.bf16.mxu0 %vm3374_vm1, %v3373_v1 }
 0xab7   : > { %v1958_v28 = vpop.f32.mrb[48].mxu0 }
 0xab8   : > { %v1959_v32 = vadd.f32 %v2657_v26, %v1958_v28  ;;  %v2992_v34 = vpop.f32.mrb[49].mxu0 }
 0xab9   : > { %v1961_v33 = vpop.f32.mrb[50].mxu0 }
 0xaba   : > { %v1986_v39 = vmul.f32 %v2667_v30, %v1959_v32  ;;  %v1962_v36 = vadd.f32 %v2657_v26, %v1961_v33  ;;  %v2993_v40 = vpop.f32.mrb[51].mxu0  ;;  %v3361_v32 = vld [vmem:[%s4162_s1 + $0x1e0] sm:$0xff]  }
 0xabb   : > { %3027 = vmatpush3.bf16.msra.mxu0 %v3361_v32 }
 0xabc   : > { %v1997_v41 = vadd.f32 %v2668_v31, %v1986_v39  ;;  %v1987_v42 = vmul.f32 %v2667_v30, %v1962_v36  ;;  %3028 = vmatprep.subr.bf16.mxu0 %v3373_v1 }
 0xabe   : > { %v2003_v45 = vmax.f32 %v1997_v41, 0.0  ;;  %v1998_v43 = vadd.f32 %v2668_v31, %v1987_v42 }
 0xabf   : > { %v1966_v44 = vpop.f32.mrb[52].mxu0 }
 0xac0   : > { %2009 = vst.msk [vmem:[#allocation2 + $0x2] sm:$0xff] %vm172_vm3, %v2003_v45  ;;  %v2004_v52 = vmax.f32 %v1998_v43, 0.0  ;;  %v1967_v47 = vadd.f32 %v2657_v26, %v1966_v44  ;;  %v2996_v50 = vpop.f32.mrb[53].mxu0 }
 0xac1   : > { %v1969_v48 = vpop.f32.mrb[54].mxu0 }
 0xac2   : > { %2010 = vst.msk [vmem:[#allocation2 + $0xa] sm:$0xff] %vm172_vm3, %v2004_v52  ;;  %v1988_v51 = vmul.f32 %v2667_v30, %v1967_v47  ;;  %v1970_v53 = vadd.f32 %v2657_v26, %v1969_v48  ;;  %v2997_v54 = vpop.f32.mrb[55].mxu0  ;;  %v3281_v55 = vpack.i.bf16 %v2004_v52, %v2003_v45 }
 0xac4   : > { %v1999_v57 = vadd.f32 %v2668_v31, %v1988_v51  ;;  %v1989_v59 = vmul.f32 %v2667_v30, %v1970_v53  ;;  %3282 = vrot.lane.b32.xlu0 %v3281_v55, %s3375_s15 }
 0xac6   : > { %v2005_v63 = vmax.f32 %v1999_v57, 0.0  ;;  %v2000_v2 = vadd.f32 %v2668_v31, %v1989_v59 }
 0xac7   : > { %v1974_v5 = vpop.f32.mrb[56].mxu0  ;;  %v2015_v40 = vld [vmem:[#allocation2] sm:$0xff] }
 0xac8   : > { %2011 = vst.msk [vmem:[#allocation2 + $0x12] sm:$0xff] %vm172_vm3, %v2005_v63  ;;  %v2006_v13 = vmax.f32 %v2000_v2, 0.0  ;;  %v1975_v6 = vadd.f32 %v2657_v26, %v1974_v5  ;;  %v3000_v8 = vpop.f32.mrb[57].mxu0 }
 0xac9   : > { %v1977_v9 = vpop.f32.mrb[58].mxu0  ;;  %v2021_v18 = vld [vmem:[#allocation2 + $0x4] sm:$0xff] }
 0xaca   : > { %2012 = vst.msk [vmem:[#allocation2 + $0x1a] sm:$0xff] %vm172_vm3, %v2006_v13  ;;  %v1990_v10 = vmul.f32 %v2667_v30, %v1975_v6  ;;  %v1978_v11 = vadd.f32 %v2657_v26, %v1977_v9  ;;  %v3001_v16 = vpop.f32.mrb[59].mxu0  ;;  %v3291_v12 = vpack.i.bf16 %v2006_v13, %v2005_v63  ;;  %v2016_v37 = vld [vmem:[#allocation2 + $0x8] sm:$0xff] }
 0xacc   : > { %v2001_v19 = vadd.f32 %v2668_v31, %v1990_v10  ;;  %v1991_v15 = vmul.f32 %v2667_v30, %v1978_v11  ;;  %3292 = vrot.lane.b32.xlu0 %v3291_v12, %s3375_s15 }
 0xace   : > { %v2007_v17 = vmax.f32 %v2001_v19, 0.0  ;;  %v2002_v25 = vadd.f32 %v2668_v31, %v1991_v15  ;;  %v3362_v31 = vld [vmem:[%s4162_s1 + $0x1e8] sm:$0xff]  }
 0xacf   : > { %v2022_v21 = vld [vmem:[#allocation2 + $0xc] sm:$0xff]  ;;  %3029 = vmatpush3.bf16.msra.mxu0 %v3362_v31 }
 0xad0   : > { %2013 = vst.msk [vmem:[#allocation2 + $0x22] sm:$0xff] %vm172_vm3, %v2007_v17  ;;  %v2008_v22 = vmax.f32 %v2002_v25, 0.0  ;;  %v3286_v27 = vpack.i.bf16 %v2022_v21, %v2021_v18  ;;  %v2017_v53 = vld [vmem:[#allocation2 + $0x10] sm:$0xff] }
 0xad1   : > { %v2023_v29 = vld [vmem:[#allocation2 + $0x14] sm:$0xff] }
 0xad2   : > { %2014 = vst.msk [vmem:[#allocation2 + $0x2a] sm:$0xff] %vm172_vm3, %v2008_v22  ;;  %3287 = vrot.lane.b32.xlu1 %v3286_v27, %s3376_s19  ;;  %v3301_v23 = vpack.i.bf16 %v2008_v22, %v2007_v17  ;;  %v2018_v54 = vld [vmem:[#allocation2 + $0x18] sm:$0xff]  ;;  %v3363_v21 = vld [vmem:[%s4162_s1 + $0x210] sm:$0xff]  }
 0xad3   : > { %v3364_v22 = vld [vmem:[%s4162_s1 + $0x218] sm:$0xff]  }
 0xad4   : > { %3302 = vrot.lane.b32.xlu0 %v3301_v23, %s3375_s15  ;;  %v2681_v27 = vld [vmem:[%s4163_s2 + $0x19] ss:$0 sm:$0xff] }
 0xad7   : > { %v2024_v24 = vld [vmem:[#allocation2 + $0x1c] sm:$0xff] }
 0xad8   : > { %v3296_v26 = vpack.i.bf16 %v2024_v24, %v2023_v29  ;;  %v2019_v16 = vld [vmem:[#allocation2 + $0x20] sm:$0xff] }
 0xad9   : > { %v2025_v28 = vld [vmem:[#allocation2 + $0x24] sm:$0xff]  ;;  %v2026_v30 = vld [vmem:[#allocation2 + $0x2c] sm:$0xff] }
 0xada   : > { %3297 = vrot.lane.b32.xlu1 %v3296_v26, %s3376_s19  ;;  %v3306_v34 = vpack.i.bf16 %v2026_v30, %v2025_v28  ;;  %v2020_v12 = vld [vmem:[#allocation2 + $0x28] sm:$0xff] }
 0xade   : > { %3307 = vrot.lane.b32.xlu1 %v3306_v34, %s3376_s19 }
 0xb36   : > { %v3283_v33 = vpop.permute.xlu0 %3282 }
 0xb37   : > { %v3285_v35 = vunpack.i.h.bf16 %v3283_v33  ;;  %v3284_v39 = vunpack.i.l.bf16 %v3283_v33 }
 0xb39   : > { %v2075_v45 = vsel %vm172_vm3, %v2015_v40, %v3284_v39  ;;  %v2076_v43 = vsel %vm172_vm3, %v2016_v37, %v3285_v35 }
 0xb3e   : > { %v3293_v44 = vpop.permute.xlu0 %3292 }
 0xb3f   : > { %v3295_v48 = vunpack.i.h.bf16 %v3293_v44  ;;  %v3294_v49 = vunpack.i.l.bf16 %v3293_v44 }
 0xb41   : > { %v2077_v7 = vsel %vm172_vm3, %v2017_v53, %v3294_v49  ;;  %v2078_v63 = vsel %vm172_vm3, %v2018_v54, %v3295_v48 }
 0xb44   : > { %v3288_v36 = vpop.permute.xlu1 %3287 }
 0xb45   : > { %v3290_v41 = vunpack.i.h.bf16 %v3288_v36  ;;  %v3289_v42 = vunpack.i.l.bf16 %v3288_v36 }
 0xb46   : > { %v3303_v55 = vpop.permute.xlu0 %3302 }
 0xb47   : > { %v2082_v52 = vsel %vm458_vm5, %v2076_v43, %v3290_v41  ;;  %v2081_v47 = vsel %vm458_vm5, %v2075_v45, %v3289_v42  ;;  %v3305_v13 = vunpack.i.h.bf16 %v3303_v55  ;;  %v3304_v6 = vunpack.i.l.bf16 %v3303_v55 }
 0xb48   : > { %v2100_v50 = vpack.c.bf16 %v2082_v52, %v2081_v47 }
 0xb49   : > { %v2079_v19 = vsel %vm172_vm3, %v2019_v16, %v3304_v6  ;;  %v2080_v15 = vsel %vm172_vm3, %v2020_v12, %v3305_v13 }
 0xb4a   : > { %3015 = vmatmul.mubr.msk.bf16.vlgmr.msra.gmra.mrb[48].mxu1 %vm522_vm6, %v2100_v50 }
 0xb4b   : > { %3018 = vmatprep.mubr.msk.bf16.mxu1 %vm3374_vm1, %v3373_v1  ;;  %3043 = vmatpush3.bf16.msra.mxu1 %v3363_v21 }
 0xb4c   : > { %v3298_v51 = vpop.permute.xlu1 %3297  ;;  %3044 = vmatprep.subr.bf16.mxu1 %v3373_v1 }
 0xb4d   : > { %v3300_v57 = vunpack.i.h.bf16 %v3298_v51  ;;  %v3299_v59 = vunpack.i.l.bf16 %v3298_v51 }
 0xb4f   : > { %v2084_v2 = vsel %vm458_vm5, %v2078_v63, %v3300_v57  ;;  %v2083_v5 = vsel %vm458_vm5, %v2077_v7, %v3299_v59  ;;  %3045 = vmatpush3.bf16.msra.mxu1 %v3364_v22 }
 0xb50   : > { %v2101_v8 = vpack.c.bf16 %v2084_v2, %v2083_v5  ;;  %v3308_v9 = vpop.permute.xlu1 %3307 }
 0xb51   : > { %v3310_v10 = vunpack.i.h.bf16 %v3308_v9  ;;  %v3309_v11 = vunpack.i.l.bf16 %v3308_v9 }
 0xb52   : > { %3019 = vmatmul.mubr.msk.bf16.gmra.mrb[52].mxu1 %vm522_vm6, %v2101_v8 }
 0xb53   : > { %3022 = vmatprep.mubr.msk.bf16.mxu1 %vm3374_vm1, %v3373_v1  ;;  %v2085_v17 = vsel %vm458_vm5, %v2079_v19, %v3309_v11  ;;  %v2086_v25 = vsel %vm458_vm5, %v2080_v15, %v3310_v10 }
 0xb54   : > { %v2102_v18 = vpack.c.bf16 %v2086_v25, %v2085_v17 }
 0xb5a   : > { %3023 = vmatmul.mubr.msk.bf16.gmra.mrb[56].mxu1 %vm522_vm6, %v2102_v18 }
 0xb5b   : > { %3046 = vmatprep.mubr.msk.bf16.mxu1 %vm3374_vm1, %v3373_v1 }
 0xc1d   : > { %v2187_v23 = vpop.f32.mrb[48].mxu1 }
 0xc1e   : > { %v2188_v29 = vadd.f32 %v2681_v27, %v2187_v23  ;;  %v3016_v24 = vpop.f32.mrb[49].mxu1 }
 0xc1f   : > { %v2190_v26 = vpop.f32.mrb[50].mxu1 }
 0xc20   : > { %v2191_v28 = vadd.f32 %v2681_v27, %v2190_v26  ;;  %v3017_v30 = vpop.f32.mrb[51].mxu1  ;;  %v2210_v32 = vadd.f32 %v2188_v29, %v3954_v38 }
 0xc22   : > { %v2211_v34 = vadd.f32 %v2191_v28, %v3964_v46 }
 0xc24   : > { %v2221_v31 = vpack.c.bf16 %v2211_v34, %v2210_v32 }
 0xc25   : > { %v2195_v33 = vpop.f32.mrb[52].mxu1 }
 0xc26   : > { %v2196_v35 = vadd.f32 %v2681_v27, %v2195_v33  ;;  %v3020_v39 = vpop.f32.mrb[53].mxu1  ;;  %3031 = vmatmul.mubr.msk.bf16.vlgmr.msra.gmra.mrb[60].mxu0 %vm172_vm3, %v2221_v31 }
 0xc27   : > { %v2198_v36 = vpop.f32.mrb[54].mxu1  ;;  %3034 = vmatprep.mubr.msk.bf16.mxu0 %vm3374_vm1, %v3373_v1 }
 0xc28   : > { %v2199_v40 = vadd.f32 %v2681_v27, %v2198_v36  ;;  %v3021_v37 = vpop.f32.mrb[55].mxu1  ;;  %v2212_v41 = vadd.f32 %v2196_v35, %v3972_v61  ;;  %v2493_v61 = vld [vmem:[%s4163_s2 + $0x1] ss:$0 sm:$0xff] }
 0xc29   : > { %v339_v53 = vadd.f32 %v2493_v61, %v3551_v58  ;;  %v344_v2 = vadd.f32 %v2493_v61, %v3553_v60  ;;  %v352_v12 = vadd.f32 %v2493_v61, %v3557_v0  ;;  %v355_v15 = vadd.f32 %v2493_v61, %v3559_v3  ;;  %v2710_v0 = vld [vmem:[%s4163_s2 + $0x1b] ss:$0 sm:$0xff] }
 0xc2a   : > { %v2213_v42 = vadd.f32 %v2199_v40, %v3981_v4  ;;  %v336_v4 = vadd.f32 %v2493_v61, %v3549_v56  ;;  %v347_v56 = vadd.f32 %v2493_v61, %v3555_v62 }
 0xc2c   : > { %v2222_v45 = vpack.c.bf16 %v2213_v42, %v2212_v41 }
 0xc2d   : > { %v2203_v38 = vpop.f32.mrb[56].mxu1 }
 0xc2e   : > { %v2204_v43 = vadd.f32 %v2681_v27, %v2203_v38  ;;  %v3024_v46 = vpop.f32.mrb[57].mxu1  ;;  %3035 = vmatmul.mubr.msk.bf16.gmra.mrb[64].mxu0 %vm172_vm3, %v2222_v45 }
 0xc2f   : > { %v2206_v44 = vpop.f32.mrb[58].mxu1  ;;  %3038 = vmatprep.mubr.msk.bf16.mxu0 %vm3374_vm1, %v3373_v1 }
 0xc30   : > { %v2207_v52 = vadd.f32 %v2681_v27, %v2206_v44  ;;  %v3025_v47 = vpop.f32.mrb[59].mxu1  ;;  %v2214_v50 = vadd.f32 %v2204_v43, %v3991_v14  ;;  %v2700_v14 = vld [vmem:[%s4163_s2 + $0x1a] ss:$0 sm:$0xff] }
 0xc32   : > { %v2215_v48 = vadd.f32 %v2207_v52, %v3997_v20 }
 0xc34   : > { %v2223_v49 = vpack.c.bf16 %v2215_v48, %v2214_v50 }
 0xc36   : > { %3039 = vmatmul.mubr.msk.bf16.gmra.mrb[68].mxu0 %vm172_vm3, %v2223_v49 }
 0xcf9   : > { %v2279_v51 = vpop.f32.mrb[60].mxu0 }
 0xcfa   : > { %v2302_v54 = vadd.f32 %v2279_v51, %v336_v4  ;;  %v3032_v55 = vpop.f32.mrb[61].mxu0 }
 0xcfb   : > { %v2282_v57 = vpop.f32.mrb[62].mxu0 }
 0xcfc   : > { %v2303_v20 = vadd.f32 %v2282_v57, %v339_v53  ;;  %v3033_v59 = vpop.f32.mrb[63].mxu0  ;;  %v2313_v7 = vadd.f32 %v2700_v14, %v2302_v54 }
 0xcfe   : > { %v2314_v63 = vadd.f32 %v2700_v14, %v2303_v20 }
 0xd00   : > { %v2324_v5 = vpack.c.bf16 %v2314_v63, %v2313_v7 }
 0xd01   : > { %v2287_v13 = vpop.f32.mrb[64].mxu0 }
 0xd02   : > { %v2304_v6 = vadd.f32 %v2287_v13, %v344_v2  ;;  %v3036_v8 = vpop.f32.mrb[65].mxu0  ;;  %3047 = vmatmul.mubr.msk.bf16.vlgmr.msra.gmra.mrb[60].mxu1 %vm172_vm3, %v2324_v5 }
 0xd03   : > { %v2290_v58 = vpop.f32.mrb[66].mxu0  ;;  %3050 = vmatprep.mubr.msk.bf16.mxu1 %vm3374_vm1, %v3373_v1 }
 0xd04   : > { %v2305_v9 = vadd.f32 %v2290_v58, %v347_v56  ;;  %v3037_v10 = vpop.f32.mrb[67].mxu0  ;;  %v2315_v11 = vadd.f32 %v2700_v14, %v2304_v6 }
 0xd06   : > { %v2316_v16 = vadd.f32 %v2700_v14, %v2305_v9 }
 0xd08   : > { %v2325_v60 = vpack.c.bf16 %v2316_v16, %v2315_v11 }
 0xd09   : > { %v2295_v19 = vpop.f32.mrb[68].mxu0 }
 0xd0a   : > { %v2306_v62 = vadd.f32 %v2295_v19, %v352_v12  ;;  %v3040_v17 = vpop.f32.mrb[69].mxu0  ;;  %3051 = vmatmul.mubr.msk.bf16.gmra.mrb[64].mxu1 %vm172_vm3, %v2325_v60 }
 0xd0b   : > { %v2298_v25 = vpop.f32.mrb[70].mxu0  ;;  %3054 = vmatprep.mubr.msk.bf16.mxu1 %vm3374_vm1, %v3373_v1 }
 0xd0c   : > { %v2307_v18 = vadd.f32 %v2298_v25, %v355_v15  ;;  %v3041_v21 = vpop.f32.mrb[71].mxu0  ;;  %v2317_v22 = vadd.f32 %v2700_v14, %v2306_v62 }
 0xd0e   : > { %v2318_v27 = vadd.f32 %v2700_v14, %v2307_v18 }
 0xd10   : > { %v2326_v23 = vpack.c.bf16 %v2318_v27, %v2317_v22 }
 0xd12   : > { %3055 = vmatmul.mubr.msk.bf16.gmra.mrb[68].mxu1 %vm172_vm3, %v2326_v23 }
 0xdd5   : > { %v2382_v3 = vpop.f32.mrb[60].mxu1 }
 0xdd6   : > { %v2410_v29 = vadd.f32 %v2710_v0, %v2382_v3  ;;  %v3048_v1 = vpop.f32.mrb[61].mxu1 }
 0xdd7   : > { %v2385_v24 = vpop.f32.mrb[62].mxu1 }
 0xdd8   : > { %2417 = vst.msk [vmem:[%s170_s30] sm:$0xff] %vm2416_vm7, %v2410_v29  ;;  %v2411_v26 = vadd.f32 %v2710_v0, %v2385_v24  ;;  %v3049_v28 = vpop.f32.mrb[63].mxu1 }
 0xdda   : > { %2418 = vst.msk [vmem:[%s170_s30 + $0x8] sm:$0xff] %vm2416_vm7, %v2411_v26 }
 0xddd   : > { %v2390_v30 = vpop.f32.mrb[64].mxu1 }
 0xdde   : > { %v2412_v32 = vadd.f32 %v2710_v0, %v2390_v30  ;;  %v3052_v34 = vpop.f32.mrb[65].mxu1 }
 0xddf   : > { %v2393_v31 = vpop.f32.mrb[66].mxu1 }
 0xde0   : > { %2419 = vst.msk [vmem:[%s170_s30 + $0x10] sm:$0xff] %vm2416_vm7, %v2412_v32  ;;  %v2413_v33 = vadd.f32 %v2710_v0, %v2393_v31  ;;  %v3053_v35 = vpop.f32.mrb[67].mxu1 }
 0xde2   : > { %2420 = vst.msk [vmem:[%s170_s30 + $0x18] sm:$0xff] %vm2416_vm7, %v2413_v33 }
 0xde5   : > { %v2398_v39 = vpop.f32.mrb[68].mxu1 }
 0xde6   : > { %v2414_v36 = vadd.f32 %v2710_v0, %v2398_v39  ;;  %v3056_v40 = vpop.f32.mrb[69].mxu1 }
 0xde7   : > { %v2401_v37 = vpop.f32.mrb[70].mxu1 }
 0xde8   : > { %2421 = vst.msk [vmem:[%s170_s30 + $0x20] sm:$0xff] %vm2416_vm7, %v2414_v36  ;;  %v2415_v41 = vadd.f32 %v2710_v0, %v2401_v37  ;;  %v3057_v42 = vpop.f32.mrb[71].mxu1 }
 0xdea   : > { %2422 = vst.msk [vmem:[%s170_s30 + $0x28] sm:$0xff] %vm2416_vm7, %v2415_v41 }
 0xdeb PF: > { %s13_s12 = sadd.s32 1, %s3371_s12  }
 0xdec   : > { %p10_p4 = scmp.ge.s32.totalorder %s13_s12, 4  }
 0xdee   :  { %12 = sbr.rel (!%p10_p4) target bundleno = 1 (0x1), region = 73 }

</bundles_post_ra>
